<compile_context>
chip_gen: v5e
topology: v5e:2x2
jax: 0.10.0
libtpu: 0.0.40
codegen_flags: <defaults>
</compile_context>

<pallas_src>
import functools

import jax
import jax.numpy as jnp
import numpy as np
from jax.experimental import pallas as pl
from jax.experimental.pallas import tpu as pltpu


# ---------------------------------------------------------------------------
# Config analogous to `mc` in the PyTorch module.
# ---------------------------------------------------------------------------
class MC:
    n_series = 8
    seasonality = (4,)      # len(seasonality) == 1 case of the module
    input_size = 8
    output_size = 4
    exogenous_size = 0
    noise_std = 0.0


# ---------------------------------------------------------------------------
# Pallas kernel: levels/seasonalities recursion + window normalization.
# ---------------------------------------------------------------------------
def _es_kernel(T, m, I, O, n_windows,
               y_ref, lev_raw_ref, seas_raw_ref, init_raw_ref,
               levels_ref, seasons_ref, wyh_ref, wy_ref,
               z_ref, loglev_ref):
    # embedding -> smoothing coefficients (VPU/EUP elementwise), hoisted.
    lev_sms = jax.nn.sigmoid(lev_raw_ref[...])          # (1, S)
    seas_sms = jax.nn.sigmoid(seas_raw_ref[...])        # (1, S)
    one_m_lev = 1.0 - lev_sms
    one_m_seas = 1.0 - seas_sms

    # ---- register-cached y row loads (each row loaded at most once). -------
    y_cache = [None] * T

    def yrow(t):
        if y_cache[t] is None:
            y_cache[t] = y_ref[pl.ds(t, 1), :]
        return y_cache[t]

    # ---- 8-row slab store accumulators (vst is the scarce VLIW slot). ------
    lev_pending, seas_pending = [], []
    lev_base = 0
    seas_base = 0

    def push_lev(row):
        nonlocal lev_base
        lev_pending.append(row)
        if len(lev_pending) == 8:
            levels_ref[pl.ds(lev_base, 8), :] = jnp.concatenate(lev_pending, axis=0)
            lev_base += 8
            lev_pending.clear()

    def push_seas(row):
        nonlocal seas_base
        seas_pending.append(row)
        if len(seas_pending) == 8:
            seasons_ref[pl.ds(seas_base, 8), :] = jnp.concatenate(seas_pending, axis=0)
            seas_base += 8
            seas_pending.clear()

    def flush_pending():
        if lev_pending:
            n = len(lev_pending)
            levels_ref[pl.ds(lev_base, n), :] = jnp.concatenate(lev_pending, axis=0)
        if seas_pending:
            n = len(seas_pending)
            seasons_ref[pl.ds(seas_base, n), :] = jnp.concatenate(seas_pending, axis=0)

    # ---- seed seasonality: seas[0:m] = exp(embeds[:, 2:2+m]); seas[m]=seas[0]
    seas = []                                           # register-carried values
    for j in range(m):
        s_j = jnp.exp(init_raw_ref[pl.ds(j, 1), :])     # (1, S)
        seas.append(s_j)
        push_seas(s_j)
    seas.append(seas[0])
    push_seas(seas[0])

    # level[0] = y[0] / seas_prod  (seas_prod = init_seas[0], single seasonality)
    l_prev = yrow(0) / seas[0]
    push_lev(l_prev)

    # Pre-compute r[t] = y[t] / seas[t] for all steps whose season is already
    # known (the first m steps); later ratios are issued m steps ahead inside
    # the loop.  Keeps the EUP divide off the serial level chain.
    ratio = [None] * T
    for t in range(1, min(m, T - 1) + 1):
        ratio[t] = yrow(t) / seas[t]

    # ---- Holt-Winters recursion, fully unrolled; state carried in vregs. ----
    # TODO(synk): for large T switch to a lax.fori_loop over 8-step chunks with
    # (l_prev, last-m seasons, ratio ring) as carries to bound live ranges.
    for t in range(1, T):
        newlev = lev_sms * ratio[t] + one_m_lev * l_prev        # critical chain
        push_lev(newlev)
        newseas = seas_sms * (yrow(t) / newlev) + one_m_seas * seas[t]
        seas.append(newseas)
        push_seas(newseas)
        if t + m < T:
            ratio[t + m] = yrow(t + m) / newseas                # pipelined divide
        l_prev = newlev

    flush_pending()

    # ---- bulk log transforms (EUP work once, not per window). --------------
    loglev_ref[...] = jnp.log(levels_ref[...])                          # (T, S)
    z_ref[...] = jnp.log(y_ref[...]) - jnp.log(seasons_ref[pl.ds(0, T), :])

    # ---- window extraction: offset-major aligned slab subtract/stores. -----
    #   wyh[d, i, :] = z[i + d]     - log(level[i + I - 1])
    #   wy [d, i, :] = z[i + I + d] - log(level[i + I])
    # TODO(synk): gaussian_noise(std=mc.noise_std) omitted (noise_std == 0.0);
    # torch's RNG stream cannot be reproduced bit-exactly anyway.
    lev_hat = loglev_ref[pl.ds(I - 1, n_windows), :]             # (n_windows, S)
    lev_out = loglev_ref[pl.ds(I, n_windows), :]                 # (n_windows, S)
    for d in range(I):
        wyh_ref[d] = z_ref[pl.ds(d, n_windows), :] - lev_hat
    for d in range(O):
        wy_ref[d] = z_ref[pl.ds(I + d, n_windows), :] - lev_out


# ---------------------------------------------------------------------------
# Wrapper (plain-JAX glue: embedding gather, padding, transposes).
# ---------------------------------------------------------------------------
def _pick_tiling(S_pad):
    """Per-generation series-tile width and scoped-VMEM limit."""
    kind = ""
    try:
        kind = jax.devices()[0].device_kind.lower()
    except Exception:
        pass
    is_v7 = "v7" in kind
    cap = 256 if is_v7 else 512                 # v7x: 64 MiB VMEM -> narrower tiles
    vmem_limit = (48 << 20) if is_v7 else (64 << 20)
    s_tile = 128
    for cand in (512, 384, 256, 128):
        if cand <= cap and S_pad % cand == 0:
            s_tile = cand
            break
    # v7x: keep >= 2 series tiles so both TensorCores get work.
    if is_v7 and S_pad // s_tile < 2 and S_pad >= 256:
        s_tile = max(128, (S_pad // 2 // 128) * 128)
    return s_tile, vmem_limit


def es_forward(y, idxs, embed_weight, mc):
    """Training-mode ES.forward, fused into a single Pallas kernel.

    y            : (n_series, n_time) f32
    idxs         : (batch,) int32   (batch == n_series, as the module assumes)
    embed_weight : (n_series, 1 + len(seasonality) + sum(seasonality)) f32
    Returns (windows_y_hat, windows_y, levels, [seasonalities1]) with torch shapes.
    """
    assert len(mc.seasonality) == 1, "kernel instantiated for the single-seasonality case"
    # TODO(synk): len(seasonality) == 2 (dual coupled seasonal recursion) not implemented.
    m = int(mc.seasonality[0])
    S, T = y.shape
    I, O = mc.input_size, mc.output_size
    n_windows = T - I - O + 1
    assert n_windows > 0

    embeds = jnp.take(embed_weight, idxs, axis=0)          # (S, 2+m) gather (glue)
    lev_raw = embeds[:, 0:1].T.astype(jnp.float32)         # (1, S)
    seas_raw = embeds[:, 1:2].T.astype(jnp.float32)        # (1, S)
    init_raw = embeds[:, 2:2 + m].T.astype(jnp.float32)    # (m, S)
    y_tm = y.T.astype(jnp.float32)                         # (T, S)  time-major

    # Lane-dense padding: series axis -> multiple of 128, padded with benign
    # values (y=1, raw embeds=0 -> exp=1 / sigmoid=0.5) so padded lanes stay
    # finite and all stores are unmasked full-lane ops.
    S_pad = -(-S // 128) * 128
    pad = S_pad - S
    if pad:
        y_tm = jnp.pad(y_tm, ((0, 0), (0, pad)), constant_values=1.0)
        lev_raw = jnp.pad(lev_raw, ((0, 0), (0, pad)))
        seas_raw = jnp.pad(seas_raw, ((0, 0), (0, pad)))
        init_raw = jnp.pad(init_raw, ((0, 0), (0, pad)))

    s_tile, vmem_limit = _pick_tiling(S_pad)
    n_s_tiles = S_pad // s_tile

    kernel = functools.partial(_es_kernel, T, m, I, O, n_windows)
    f32 = jnp.float32

    levels_t, seasons_t, wyh_t, wy_t = pl.pallas_call(
        kernel,
        grid=(n_s_tiles,),
        out_shape=(
            jax.ShapeDtypeStruct((T, S_pad), f32),               # levels (time-major)
            jax.ShapeDtypeStruct((T + m, S_pad), f32),            # seasonality 1
            jax.ShapeDtypeStruct((I, n_windows, S_pad), f32),     # windows_y_hat (offset-major)
            jax.ShapeDtypeStruct((O, n_windows, S_pad), f32),     # windows_y (offset-major)
        ),
        in_specs=[
            pl.BlockSpec((T, s_tile), lambda s: (0, s)),
            pl.BlockSpec((1, s_tile), lambda s: (0, s)),
            pl.BlockSpec((1, s_tile), lambda s: (0, s)),
            pl.BlockSpec((m, s_tile), lambda s: (0, s)),
        ],
        out_specs=(
            pl.BlockSpec((T, s_tile), lambda s: (0, s)),
            pl.BlockSpec((T + m, s_tile), lambda s: (0, s)),
            pl.BlockSpec((I, n_windows, s_tile), lambda s: (0, 0, s)),
            pl.BlockSpec((O, n_windows, s_tile), lambda s: (0, 0, s)),
        ),
        scratch_shapes=[
            pltpu.VMEM((T, s_tile), f32),    # z    = log(y) - log(seas)
            pltpu.VMEM((T, s_tile), f32),    # log(levels)
        ],
        compiler_params=pltpu.CompilerParams(
            dimension_semantics=("parallel",),
            vmem_limit_bytes=vmem_limit),
    )(y_tm, lev_raw, seas_raw, init_raw)

    # Glue to the torch return convention; strip the lane padding.
    levels = levels_t[:, :S].T                                   # (S, T)
    seasonalities = [seasons_t[:, :S].T]                         # [(S, T+m)]
    windows_y_hat = jnp.transpose(wyh_t[:, :, :S], (1, 2, 0))    # (n_windows, S, I)
    windows_y = jnp.transpose(wy_t[:, :, :S], (1, 2, 0))         # (n_windows, S, O)
    # TODO(synk): exogenous `categories` concat skipped (mc.exogenous_size == 0).
    return windows_y_hat, windows_y, levels, seasonalities


# ---------------------------------------------------------------------------
# Pure NumPy reference (mirrors the PyTorch module, training mode, no noise).
# ---------------------------------------------------------------------------
def es_reference(y, idxs, W, mc):
    y = np.asarray(y, np.float64)
    W = np.asarray(W, np.float64)
    m = int(mc.seasonality[0])
    S, T = y.shape
    emb = W[np.asarray(idxs)]
    lev_sms = 1.0 / (1.0 + np.exp(-emb[:, 0]))
    seas_sms = 1.0 / (1.0 + np.exp(-emb[:, 1]))
    init_seas = np.exp(emb[:, 2:2 + m])
    seasons = [init_seas[:, i] for i in range(m)] + [init_seas[:, 0]]
    levels = [y[:, 0] / init_seas[:, 0]]
    for t in range(1, T):
        newlev = lev_sms * (y[:, t] / seasons[t]) + (1 - lev_sms) * levels[t - 1]
        levels.append(newlev)
        newseas = seas_sms * (y[:, t] / newlev) + (1 - seas_sms) * seasons[t]
        seasons.append(newseas)
    levels = np.stack(levels, 1)        # (S, T)
    seasons = np.stack(seasons, 1)      # (S, T+m)
    I, O = mc.input_size, mc.output_size
    n_w = T - I - O + 1
    wyh = np.zeros((n_w, S, I))
    wy = np.zeros((n_w, S, O))
    for i in range(n_w):
        s, e = i, i + I
        wyh[i] = np.log(y[:, s:e] / levels[:, e - 1:e] / seasons[:, s:e])
        ys, ye = e, e + O
        wy[i] = np.log(y[:, ys:ye] / levels[:, ys:ys + 1] / seasons[:, ys:ye])
    return wyh, wy, levels, seasons


if __name__ == "__main__":
    mc = MC()
    n_time = 24
    embeds_size = 1 + len(mc.seasonality) + sum(mc.seasonality)   # 6

    key = jax.random.PRNGKey(0)
    # strictly positive series (module takes log of ratios)
    y = jax.random.uniform(key, (mc.n_series, n_time), jnp.float32,
                           minval=0.5, maxval=2.0)
    idxs = jnp.arange(mc.n_series, dtype=jnp.int32)
    # deterministic init exactly as in the module: ones * 0.5
    embed_weight = jnp.full((mc.n_series, embeds_size), 0.5, dtype=jnp.float32)

    wyh, wy, levels, seasonalities = es_forward(y, idxs, embed_weight, mc)
    jax.block_until_ready((wyh, wy, levels, seasonalities[0]))

    wyh_r, wy_r, levels_r, seasons_r = es_reference(y, idxs, embed_weight, mc)
    np.testing.assert_allclose(np.asarray(levels), levels_r, rtol=2e-5, atol=2e-5)
    np.testing.assert_allclose(np.asarray(seasonalities[0]), seasons_r, rtol=2e-5, atol=2e-5)
    np.testing.assert_allclose(np.asarray(wyh), wyh_r, rtol=2e-5, atol=2e-5)
    np.testing.assert_allclose(np.asarray(wy), wy_r, rtol=2e-5, atol=2e-5)

    print("KERNEL_OK")
</pallas_src>

<mosaic_0001>
module attributes {stable_mosaic.version = 11 : i64} {
  func.func @_es_kernel(%arg0: i32, %arg1: memref<24x128xf32, #tpu.memory_space<vmem>>, %arg2: memref<1x128xf32, #tpu.memory_space<vmem>>, %arg3: memref<1x128xf32, #tpu.memory_space<vmem>>, %arg4: memref<4x128xf32, #tpu.memory_space<vmem>>, %arg5: memref<24x128xf32, #tpu.memory_space<vmem>>, %arg6: memref<28x128xf32, #tpu.memory_space<vmem>>, %arg7: memref<8x13x128xf32, #tpu.memory_space<vmem>>, %arg8: memref<4x13x128xf32, #tpu.memory_space<vmem>>, %arg9: memref<24x128xf32, #tpu.memory_space<vmem>>, %arg10: memref<24x128xf32, #tpu.memory_space<vmem>>) attributes {dimension_semantics = [#tpu.dimension_semantics<parallel>], iteration_bounds = array<i64: 1>, scalar_prefetch = 0 : i64, scratch_operands = 2 : i64, tpu.core_type = #tpu.core_type<tc>, window_params = [{transform_indices = @transform_0, window_bounds = array<i64: 24, 128>}, {transform_indices = @transform_1, window_bounds = array<i64: 1, 128>}, {transform_indices = @transform_2, window_bounds = array<i64: 1, 128>}, {transform_indices = @transform_3, window_bounds = array<i64: 4, 128>}, {transform_indices = @transform_4, window_bounds = array<i64: 24, 128>}, {transform_indices = @transform_5, window_bounds = array<i64: 28, 128>}, {transform_indices = @transform_6, window_bounds = array<i64: 8, 13, 128>}, {transform_indices = @transform_7, window_bounds = array<i64: 4, 13, 128>}]} {
    %c0 = arith.constant 0 : index
    %c0_0 = arith.constant 0 : index
    %0 = vector.load %arg2[%c0, %c0_0] : memref<1x128xf32, #tpu.memory_space<vmem>>, vector<1x128xf32>
    %1 = arith.negf %0 : vector<1x128xf32>
    %2 = math.exp %1 : vector<1x128xf32>
    %cst = arith.constant 1.000000e+00 : f32
    %3 = vector.broadcast %cst : f32 to vector<1x128xf32>
    %4 = arith.addf %3, %2 : vector<1x128xf32>
    %5 = arith.divf %3, %4 : vector<1x128xf32>
    %c0_1 = arith.constant 0 : index
    %c0_2 = arith.constant 0 : index
    %6 = vector.load %arg3[%c0_1, %c0_2] : memref<1x128xf32, #tpu.memory_space<vmem>>, vector<1x128xf32>
    %7 = arith.negf %6 : vector<1x128xf32>
    %8 = math.exp %7 : vector<1x128xf32>
    %cst_3 = arith.constant 1.000000e+00 : f32
    %9 = vector.broadcast %cst_3 : f32 to vector<1x128xf32>
    %10 = arith.addf %9, %8 : vector<1x128xf32>
    %11 = arith.divf %9, %10 : vector<1x128xf32>
    %cst_4 = arith.constant 1.000000e+00 : f32
    %12 = vector.broadcast %cst_4 : f32 to vector<1x128xf32>
    %13 = arith.subf %12, %5 : vector<1x128xf32>
    %cst_5 = arith.constant 1.000000e+00 : f32
    %14 = vector.broadcast %cst_5 : f32 to vector<1x128xf32>
    %15 = arith.subf %14, %11 : vector<1x128xf32>
    %c0_6 = arith.constant 0 : index
    %c0_7 = arith.constant 0 : index
    %16 = vector.load %arg4[%c0_6, %c0_7] : memref<4x128xf32, #tpu.memory_space<vmem>>, vector<1x128xf32>
    %17 = math.exp %16 : vector<1x128xf32>
    %c1 = arith.constant 1 : index
    %c0_8 = arith.constant 0 : index
    %18 = vector.load %arg4[%c1, %c0_8] : memref<4x128xf32, #tpu.memory_space<vmem>>, vector<1x128xf32>
    %19 = math.exp %18 : vector<1x128xf32>
    %c2 = arith.constant 2 : index
    %c0_9 = arith.constant 0 : index
    %20 = vector.load %arg4[%c2, %c0_9] : memref<4x128xf32, #tpu.memory_space<vmem>>, vector<1x128xf32>
    %21 = math.exp %20 : vector<1x128xf32>
    %c3 = arith.constant 3 : index
    %c0_10 = arith.constant 0 : index
    %22 = vector.load %arg4[%c3, %c0_10] : memref<4x128xf32, #tpu.memory_space<vmem>>, vector<1x128xf32>
    %23 = math.exp %22 : vector<1x128xf32>
    %c0_11 = arith.constant 0 : index
    %c0_12 = arith.constant 0 : index
    %24 = vector.load %arg1[%c0_11, %c0_12] : memref<24x128xf32, #tpu.memory_space<vmem>>, vector<1x128xf32>
    %25 = arith.divf %24, %17 : vector<1x128xf32>
    %c1_13 = arith.constant 1 : index
    %c0_14 = arith.constant 0 : index
    %26 = vector.load %arg1[%c1_13, %c0_14] : memref<24x128xf32, #tpu.memory_space<vmem>>, vector<1x128xf32>
    %27 = arith.divf %26, %19 : vector<1x128xf32>
    %c2_15 = arith.constant 2 : index
    %c0_16 = arith.constant 0 : index
    %28 = vector.load %arg1[%c2_15, %c0_16] : memref<24x128xf32, #tpu.memory_space<vmem>>, vector<1x128xf32>
    %29 = arith.divf %28, %21 : vector<1x128xf32>
    %c3_17 = arith.constant 3 : index
    %c0_18 = arith.constant 0 : index
    %30 = vector.load %arg1[%c3_17, %c0_18] : memref<24x128xf32, #tpu.memory_space<vmem>>, vector<1x128xf32>
    %31 = arith.divf %30, %23 : vector<1x128xf32>
    %c4 = arith.constant 4 : index
    %c0_19 = arith.constant 0 : index
    %32 = vector.load %arg1[%c4, %c0_19] : memref<24x128xf32, #tpu.memory_space<vmem>>, vector<1x128xf32>
    %33 = arith.divf %32, %17 : vector<1x128xf32>
    %34 = arith.mulf %5, %27 : vector<1x128xf32>
    %35 = arith.mulf %13, %25 : vector<1x128xf32>
    %36 = arith.addf %34, %35 : vector<1x128xf32>
    %37 = arith.divf %26, %36 : vector<1x128xf32>
    %38 = arith.mulf %11, %37 : vector<1x128xf32>
    %39 = arith.mulf %15, %19 : vector<1x128xf32>
    %40 = arith.addf %38, %39 : vector<1x128xf32>
    %c5 = arith.constant 5 : index
    %c0_20 = arith.constant 0 : index
    %41 = vector.load %arg1[%c5, %c0_20] : memref<24x128xf32, #tpu.memory_space<vmem>>, vector<1x128xf32>
    %42 = arith.divf %41, %40 : vector<1x128xf32>
    %43 = arith.mulf %5, %29 : vector<1x128xf32>
    %44 = arith.mulf %13, %36 : vector<1x128xf32>
    %45 = arith.addf %43, %44 : vector<1x128xf32>
    %46 = arith.divf %28, %45 : vector<1x128xf32>
    %47 = arith.mulf %11, %46 : vector<1x128xf32>
    %48 = arith.mulf %15, %21 : vector<1x128xf32>
    %49 = arith.addf %47, %48 : vector<1x128xf32>
    %c6 = arith.constant 6 : index
    %c0_21 = arith.constant 0 : index
    %50 = vector.load %arg1[%c6, %c0_21] : memref<24x128xf32, #tpu.memory_space<vmem>>, vector<1x128xf32>
    %51 = arith.divf %50, %49 : vector<1x128xf32>
    %52 = arith.mulf %5, %31 : vector<1x128xf32>
    %53 = arith.mulf %13, %45 : vector<1x128xf32>
    %54 = arith.addf %52, %53 : vector<1x128xf32>
    %55 = arith.divf %30, %54 : vector<1x128xf32>
    %56 = arith.mulf %11, %55 : vector<1x128xf32>
    %57 = arith.mulf %15, %23 : vector<1x128xf32>
    %58 = arith.addf %56, %57 : vector<1x128xf32>
    %59 = tpu.concatenate %17, %19, %21, %23, %17, %40, %49, %58 in 0 : vector<1x128xf32>, vector<1x128xf32>, vector<1x128xf32>, vector<1x128xf32>, vector<1x128xf32>, vector<1x128xf32>, vector<1x128xf32>, vector<1x128xf32> -> vector<8x128xf32>
    %c0_22 = arith.constant 0 : index
    %c0_23 = arith.constant 0 : index
    %60 = vector.load %arg6[%c0_22, %c0_23] : memref<28x128xf32, #tpu.memory_space<vmem>>, vector<8x128xf32>
    tpu.vector_store %arg6[%c0_22, %c0_23], %59 {strides = array<i32>} : memref<28x128xf32, #tpu.memory_space<vmem>>, vector<8x128xf32>,
    %c7 = arith.constant 7 : index
    %c0_24 = arith.constant 0 : index
    %61 = vector.load %arg1[%c7, %c0_24] : memref<24x128xf32, #tpu.memory_space<vmem>>, vector<1x128xf32>
    %62 = arith.divf %61, %58 : vector<1x128xf32>
    %63 = arith.mulf %5, %33 : vector<1x128xf32>
    %64 = arith.mulf %13, %54 : vector<1x128xf32>
    %65 = arith.addf %63, %64 : vector<1x128xf32>
    %66 = arith.divf %32, %65 : vector<1x128xf32>
    %67 = arith.mulf %11, %66 : vector<1x128xf32>
    %68 = arith.mulf %15, %17 : vector<1x128xf32>
    %69 = arith.addf %67, %68 : vector<1x128xf32>
    %c8 = arith.constant 8 : index
    %c0_25 = arith.constant 0 : index
    %70 = vector.load %arg1[%c8, %c0_25] : memref<24x128xf32, #tpu.memory_space<vmem>>, vector<1x128xf32>
    %71 = arith.divf %70, %69 : vector<1x128xf32>
    %72 = arith.mulf %5, %42 : vector<1x128xf32>
    %73 = arith.mulf %13, %65 : vector<1x128xf32>
    %74 = arith.addf %72, %73 : vector<1x128xf32>
    %75 = arith.divf %41, %74 : vector<1x128xf32>
    %76 = arith.mulf %11, %75 : vector<1x128xf32>
    %77 = arith.mulf %15, %40 : vector<1x128xf32>
    %78 = arith.addf %76, %77 : vector<1x128xf32>
    %c9 = arith.constant 9 : index
    %c0_26 = arith.constant 0 : index
    %79 = vector.load %arg1[%c9, %c0_26] : memref<24x128xf32, #tpu.memory_space<vmem>>, vector<1x128xf32>
    %80 = arith.divf %79, %78 : vector<1x128xf32>
    %81 = arith.mulf %5, %51 : vector<1x128xf32>
    %82 = arith.mulf %13, %74 : vector<1x128xf32>
    %83 = arith.addf %81, %82 : vector<1x128xf32>
    %84 = arith.divf %50, %83 : vector<1x128xf32>
    %85 = arith.mulf %11, %84 : vector<1x128xf32>
    %86 = arith.mulf %15, %49 : vector<1x128xf32>
    %87 = arith.addf %85, %86 : vector<1x128xf32>
    %c10 = arith.constant 10 : index
    %c0_27 = arith.constant 0 : index
    %88 = vector.load %arg1[%c10, %c0_27] : memref<24x128xf32, #tpu.memory_space<vmem>>, vector<1x128xf32>
    %89 = arith.divf %88, %87 : vector<1x128xf32>
    %90 = arith.mulf %5, %62 : vector<1x128xf32>
    %91 = arith.mulf %13, %83 : vector<1x128xf32>
    %92 = arith.addf %90, %91 : vector<1x128xf32>
    %93 = tpu.concatenate %25, %36, %45, %54, %65, %74, %83, %92 in 0 : vector<1x128xf32>, vector<1x128xf32>, vector<1x128xf32>, vector<1x128xf32>, vector<1x128xf32>, vector<1x128xf32>, vector<1x128xf32>, vector<1x128xf32> -> vector<8x128xf32>
    %c0_28 = arith.constant 0 : index
    %c0_29 = arith.constant 0 : index
    %94 = vector.load %arg5[%c0_28, %c0_29] : memref<24x128xf32, #tpu.memory_space<vmem>>, vector<8x128xf32>
    tpu.vector_store %arg5[%c0_28, %c0_29], %93 {strides = array<i32>} : memref<24x128xf32, #tpu.memory_space<vmem>>, vector<8x128xf32>,
    %95 = arith.divf %61, %92 : vector<1x128xf32>
    %96 = arith.mulf %11, %95 : vector<1x128xf32>
    %97 = arith.mulf %15, %58 : vector<1x128xf32>
    %98 = arith.addf %96, %97 : vector<1x128xf32>
    %c11 = arith.constant 11 : index
    %c0_30 = arith.constant 0 : index
    %99 = vector.load %arg1[%c11, %c0_30] : memref<24x128xf32, #tpu.memory_space<vmem>>, vector<1x128xf32>
    %100 = arith.divf %99, %98 : vector<1x128xf32>
    %101 = arith.mulf %5, %71 : vector<1x128xf32>
    %102 = arith.mulf %13, %92 : vector<1x128xf32>
    %103 = arith.addf %101, %102 : vector<1x128xf32>
    %104 = arith.divf %70, %103 : vector<1x128xf32>
    %105 = arith.mulf %11, %104 : vector<1x128xf32>
    %106 = arith.mulf %15, %69 : vector<1x128xf32>
    %107 = arith.addf %105, %106 : vector<1x128xf32>
    %c12 = arith.constant 12 : index
    %c0_31 = arith.constant 0 : index
    %108 = vector.load %arg1[%c12, %c0_31] : memref<24x128xf32, #tpu.memory_space<vmem>>, vector<1x128xf32>
    %109 = arith.divf %108, %107 : vector<1x128xf32>
    %110 = arith.mulf %5, %80 : vector<1x128xf32>
    %111 = arith.mulf %13, %103 : vector<1x128xf32>
    %112 = arith.addf %110, %111 : vector<1x128xf32>
    %113 = arith.divf %79, %112 : vector<1x128xf32>
    %114 = arith.mulf %11, %113 : vector<1x128xf32>
    %115 = arith.mulf %15, %78 : vector<1x128xf32>
    %116 = arith.addf %114, %115 : vector<1x128xf32>
    %c13 = arith.constant 13 : index
    %c0_32 = arith.constant 0 : index
    %117 = vector.load %arg1[%c13, %c0_32] : memref<24x128xf32, #tpu.memory_space<vmem>>, vector<1x128xf32>
    %118 = arith.divf %117, %116 : vector<1x128xf32>
    %119 = arith.mulf %5, %89 : vector<1x128xf32>
    %120 = arith.mulf %13, %112 : vector<1x128xf32>
    %121 = arith.addf %119, %120 : vector<1x128xf32>
    %122 = arith.divf %88, %121 : vector<1x128xf32>
    %123 = arith.mulf %11, %122 : vector<1x128xf32>
    %124 = arith.mulf %15, %87 : vector<1x128xf32>
    %125 = arith.addf %123, %124 : vector<1x128xf32>
    %c14 = arith.constant 14 : index
    %c0_33 = arith.constant 0 : index
    %126 = vector.load %arg1[%c14, %c0_33] : memref<24x128xf32, #tpu.memory_space<vmem>>, vector<1x128xf32>
    %127 = arith.divf %126, %125 : vector<1x128xf32>
    %128 = arith.mulf %5, %100 : vector<1x128xf32>
    %129 = arith.mulf %13, %121 : vector<1x128xf32>
    %130 = arith.addf %128, %129 : vector<1x128xf32>
    %131 = arith.divf %99, %130 : vector<1x128xf32>
    %132 = arith.mulf %11, %131 : vector<1x128xf32>
    %133 = arith.mulf %15, %98 : vector<1x128xf32>
    %134 = arith.addf %132, %133 : vector<1x128xf32>
    %135 = tpu.concatenate %69, %78, %87, %98, %107, %116, %125, %134 in 0 : vector<1x128xf32>, vector<1x128xf32>, vector<1x128xf32>, vector<1x128xf32>, vector<1x128xf32>, vector<1x128xf32>, vector<1x128xf32>, vector<1x128xf32> -> vector<8x128xf32>
    %c8_34 = arith.constant 8 : index
    %c0_35 = arith.constant 0 : index
    %136 = vector.load %arg6[%c8_34, %c0_35] : memref<28x128xf32, #tpu.memory_space<vmem>>, vector<8x128xf32>
    tpu.vector_store %arg6[%c8_34, %c0_35], %135 {strides = array<i32>} : memref<28x128xf32, #tpu.memory_space<vmem>>, vector<8x128xf32>,
    %c15 = arith.constant 15 : index
    %c0_36 = arith.constant 0 : index
    %137 = vector.load %arg1[%c15, %c0_36] : memref<24x128xf32, #tpu.memory_space<vmem>>, vector<1x128xf32>
    %138 = arith.divf %137, %134 : vector<1x128xf32>
    %139 = arith.mulf %5, %109 : vector<1x128xf32>
    %140 = arith.mulf %13, %130 : vector<1x128xf32>
    %141 = arith.addf %139, %140 : vector<1x128xf32>
    %142 = arith.divf %108, %141 : vector<1x128xf32>
    %143 = arith.mulf %11, %142 : vector<1x128xf32>
    %144 = arith.mulf %15, %107 : vector<1x128xf32>
    %145 = arith.addf %143, %144 : vector<1x128xf32>
    %c16 = arith.constant 16 : index
    %c0_37 = arith.constant 0 : index
    %146 = vector.load %arg1[%c16, %c0_37] : memref<24x128xf32, #tpu.memory_space<vmem>>, vector<1x128xf32>
    %147 = arith.divf %146, %145 : vector<1x128xf32>
    %148 = arith.mulf %5, %118 : vector<1x128xf32>
    %149 = arith.mulf %13, %141 : vector<1x128xf32>
    %150 = arith.addf %148, %149 : vector<1x128xf32>
    %151 = arith.divf %117, %150 : vector<1x128xf32>
    %152 = arith.mulf %11, %151 : vector<1x128xf32>
    %153 = arith.mulf %15, %116 : vector<1x128xf32>
    %154 = arith.addf %152, %153 : vector<1x128xf32>
    %c17 = arith.constant 17 : index
    %c0_38 = arith.constant 0 : index
    %155 = vector.load %arg1[%c17, %c0_38] : memref<24x128xf32, #tpu.memory_space<vmem>>, vector<1x128xf32>
    %156 = arith.divf %155, %154 : vector<1x128xf32>
    %157 = arith.mulf %5, %127 : vector<1x128xf32>
    %158 = arith.mulf %13, %150 : vector<1x128xf32>
    %159 = arith.addf %157, %158 : vector<1x128xf32>
    %160 = arith.divf %126, %159 : vector<1x128xf32>
    %161 = arith.mulf %11, %160 : vector<1x128xf32>
    %162 = arith.mulf %15, %125 : vector<1x128xf32>
    %163 = arith.addf %161, %162 : vector<1x128xf32>
    %c18 = arith.constant 18 : index
    %c0_39 = arith.constant 0 : index
    %164 = vector.load %arg1[%c18, %c0_39] : memref<24x128xf32, #tpu.memory_space<vmem>>, vector<1x128xf32>
    %165 = arith.divf %164, %163 : vector<1x128xf32>
    %166 = arith.mulf %5, %138 : vector<1x128xf32>
    %167 = arith.mulf %13, %159 : vector<1x128xf32>
    %168 = arith.addf %166, %167 : vector<1x128xf32>
    %169 = tpu.concatenate %103, %112, %121, %130, %141, %150, %159, %168 in 0 : vector<1x128xf32>, vector<1x128xf32>, vector<1x128xf32>, vector<1x128xf32>, vector<1x128xf32>, vector<1x128xf32>, vector<1x128xf32>, vector<1x128xf32> -> vector<8x128xf32>
    %c8_40 = arith.constant 8 : index
    %c0_41 = arith.constant 0 : index
    %170 = vector.load %arg5[%c8_40, %c0_41] : memref<24x128xf32, #tpu.memory_space<vmem>>, vector<8x128xf32>
    tpu.vector_store %arg5[%c8_40, %c0_41], %169 {strides = array<i32>} : memref<24x128xf32, #tpu.memory_space<vmem>>, vector<8x128xf32>,
    %171 = arith.divf %137, %168 : vector<1x128xf32>
    %172 = arith.mulf %11, %171 : vector<1x128xf32>
    %173 = arith.mulf %15, %134 : vector<1x128xf32>
    %174 = arith.addf %172, %173 : vector<1x128xf32>
    %c19 = arith.constant 19 : index
    %c0_42 = arith.constant 0 : index
    %175 = vector.load %arg1[%c19, %c0_42] : memref<24x128xf32, #tpu.memory_space<vmem>>, vector<1x128xf32>
    %176 = arith.divf %175, %174 : vector<1x128xf32>
    %177 = arith.mulf %5, %147 : vector<1x128xf32>
    %178 = arith.mulf %13, %168 : vector<1x128xf32>
    %179 = arith.addf %177, %178 : vector<1x128xf32>
    %180 = arith.divf %146, %179 : vector<1x128xf32>
    %181 = arith.mulf %11, %180 : vector<1x128xf32>
    %182 = arith.mulf %15, %145 : vector<1x128xf32>
    %183 = arith.addf %181, %182 : vector<1x128xf32>
    %c20 = arith.constant 20 : index
    %c0_43 = arith.constant 0 : index
    %184 = vector.load %arg1[%c20, %c0_43] : memref<24x128xf32, #tpu.memory_space<vmem>>, vector<1x128xf32>
    %185 = arith.divf %184, %183 : vector<1x128xf32>
    %186 = arith.mulf %5, %156 : vector<1x128xf32>
    %187 = arith.mulf %13, %179 : vector<1x128xf32>
    %188 = arith.addf %186, %187 : vector<1x128xf32>
    %189 = arith.divf %155, %188 : vector<1x128xf32>
    %190 = arith.mulf %11, %189 : vector<1x128xf32>
    %191 = arith.mulf %15, %154 : vector<1x128xf32>
    %192 = arith.addf %190, %191 : vector<1x128xf32>
    %c21 = arith.constant 21 : index
    %c0_44 = arith.constant 0 : index
    %193 = vector.load %arg1[%c21, %c0_44] : memref<24x128xf32, #tpu.memory_space<vmem>>, vector<1x128xf32>
    %194 = arith.divf %193, %192 : vector<1x128xf32>
    %195 = arith.mulf %5, %165 : vector<1x128xf32>
    %196 = arith.mulf %13, %188 : vector<1x128xf32>
    %197 = arith.addf %195, %196 : vector<1x128xf32>
    %198 = arith.divf %164, %197 : vector<1x128xf32>
    %199 = arith.mulf %11, %198 : vector<1x128xf32>
    %200 = arith.mulf %15, %163 : vector<1x128xf32>
    %201 = arith.addf %199, %200 : vector<1x128xf32>
    %c22 = arith.constant 22 : index
    %c0_45 = arith.constant 0 : index
    %202 = vector.load %arg1[%c22, %c0_45] : memref<24x128xf32, #tpu.memory_space<vmem>>, vector<1x128xf32>
    %203 = arith.divf %202, %201 : vector<1x128xf32>
    %204 = arith.mulf %5, %176 : vector<1x128xf32>
    %205 = arith.mulf %13, %197 : vector<1x128xf32>
    %206 = arith.addf %204, %205 : vector<1x128xf32>
    %207 = arith.divf %175, %206 : vector<1x128xf32>
    %208 = arith.mulf %11, %207 : vector<1x128xf32>
    %209 = arith.mulf %15, %174 : vector<1x128xf32>
    %210 = arith.addf %208, %209 : vector<1x128xf32>
    %211 = tpu.concatenate %145, %154, %163, %174, %183, %192, %201, %210 in 0 : vector<1x128xf32>, vector<1x128xf32>, vector<1x128xf32>, vector<1x128xf32>, vector<1x128xf32>, vector<1x128xf32>, vector<1x128xf32>, vector<1x128xf32> -> vector<8x128xf32>
    %c16_46 = arith.constant 16 : index
    %c0_47 = arith.constant 0 : index
    %212 = vector.load %arg6[%c16_46, %c0_47] : memref<28x128xf32, #tpu.memory_space<vmem>>, vector<8x128xf32>
    tpu.vector_store %arg6[%c16_46, %c0_47], %211 {strides = array<i32>} : memref<28x128xf32, #tpu.memory_space<vmem>>, vector<8x128xf32>,
    %c23 = arith.constant 23 : index
    %c0_48 = arith.constant 0 : index
    %213 = vector.load %arg1[%c23, %c0_48] : memref<24x128xf32, #tpu.memory_space<vmem>>, vector<1x128xf32>
    %214 = arith.divf %213, %210 : vector<1x128xf32>
    %215 = arith.mulf %5, %185 : vector<1x128xf32>
    %216 = arith.mulf %13, %206 : vector<1x128xf32>
    %217 = arith.addf %215, %216 : vector<1x128xf32>
    %218 = arith.divf %184, %217 : vector<1x128xf32>
    %219 = arith.mulf %11, %218 : vector<1x128xf32>
    %220 = arith.mulf %15, %183 : vector<1x128xf32>
    %221 = arith.addf %219, %220 : vector<1x128xf32>
    %222 = arith.mulf %5, %194 : vector<1x128xf32>
    %223 = arith.mulf %13, %217 : vector<1x128xf32>
    %224 = arith.addf %222, %223 : vector<1x128xf32>
    %225 = arith.divf %193, %224 : vector<1x128xf32>
    %226 = arith.mulf %11, %225 : vector<1x128xf32>
    %227 = arith.mulf %15, %192 : vector<1x128xf32>
    %228 = arith.addf %226, %227 : vector<1x128xf32>
    %229 = arith.mulf %5, %203 : vector<1x128xf32>
    %230 = arith.mulf %13, %224 : vector<1x128xf32>
    %231 = arith.addf %229, %230 : vector<1x128xf32>
    %232 = arith.divf %202, %231 : vector<1x128xf32>
    %233 = arith.mulf %11, %232 : vector<1x128xf32>
    %234 = arith.mulf %15, %201 : vector<1x128xf32>
    %235 = arith.addf %233, %234 : vector<1x128xf32>
    %236 = arith.mulf %5, %214 : vector<1x128xf32>
    %237 = arith.mulf %13, %231 : vector<1x128xf32>
    %238 = arith.addf %236, %237 : vector<1x128xf32>
    %239 = tpu.concatenate %179, %188, %197, %206, %217, %224, %231, %238 in 0 : vector<1x128xf32>, vector<1x128xf32>, vector<1x128xf32>, vector<1x128xf32>, vector<1x128xf32>, vector<1x128xf32>, vector<1x128xf32>, vector<1x128xf32> -> vector<8x128xf32>
    %c16_49 = arith.constant 16 : index
    %c0_50 = arith.constant 0 : index
    %240 = vector.load %arg5[%c16_49, %c0_50] : memref<24x128xf32, #tpu.memory_space<vmem>>, vector<8x128xf32>
    tpu.vector_store %arg5[%c16_49, %c0_50], %239 {strides = array<i32>} : memref<24x128xf32, #tpu.memory_space<vmem>>, vector<8x128xf32>,
    %241 = arith.divf %213, %238 : vector<1x128xf32>
    %242 = arith.mulf %11, %241 : vector<1x128xf32>
    %243 = arith.mulf %15, %210 : vector<1x128xf32>
    %244 = arith.addf %242, %243 : vector<1x128xf32>
    %245 = tpu.concatenate %221, %228, %235, %244 in 0 : vector<1x128xf32>, vector<1x128xf32>, vector<1x128xf32>, vector<1x128xf32> -> vector<4x128xf32>
    %c24 = arith.constant 24 : index
    %c0_51 = arith.constant 0 : index
    %246 = vector.load %arg6[%c24, %c0_51] : memref<28x128xf32, #tpu.memory_space<vmem>>, vector<4x128xf32>
    tpu.vector_store %arg6[%c24, %c0_51], %245 {strides = array<i32>} : memref<28x128xf32, #tpu.memory_space<vmem>>, vector<4x128xf32>,
    %c0_52 = arith.constant 0 : index
    %c0_53 = arith.constant 0 : index
    %247 = vector.load %arg5[%c0_52, %c0_53] : memref<24x128xf32, #tpu.memory_space<vmem>>, vector<24x128xf32>
    %248 = math.log %247 : vector<24x128xf32>
    %c0_54 = arith.constant 0 : index
    %c0_55 = arith.constant 0 : index
    %249 = vector.load %arg10[%c0_54, %c0_55] : memref<24x128xf32, #tpu.memory_space<vmem>>, vector<24x128xf32>
    tpu.vector_store %arg10[%c0_54, %c0_55], %248 {strides = array<i32>} : memref<24x128xf32, #tpu.memory_space<vmem>>, vector<24x128xf32>,
    %c0_56 = arith.constant 0 : index
    %c0_57 = arith.constant 0 : index
    %250 = vector.load %arg1[%c0_56, %c0_57] : memref<24x128xf32, #tpu.memory_space<vmem>>, vector<24x128xf32>
    %251 = math.log %250 : vector<24x128xf32>
    %c0_58 = arith.constant 0 : index
    %c0_59 = arith.constant 0 : index
    %252 = vector.load %arg6[%c0_58, %c0_59] : memref<28x128xf32, #tpu.memory_space<vmem>>, vector<24x128xf32>
    %253 = math.log %252 : vector<24x128xf32>
    %254 = arith.subf %251, %253 : vector<24x128xf32>
    %c0_60 = arith.constant 0 : index
    %c0_61 = arith.constant 0 : index
    %255 = vector.load %arg9[%c0_60, %c0_61] : memref<24x128xf32, #tpu.memory_space<vmem>>, vector<24x128xf32>
    tpu.vector_store %arg9[%c0_60, %c0_61], %254 {strides = array<i32>} : memref<24x128xf32, #tpu.memory_space<vmem>>, vector<24x128xf32>,
    %c7_62 = arith.constant 7 : index
    %c0_63 = arith.constant 0 : index
    %256 = vector.load %arg10[%c7_62, %c0_63] : memref<24x128xf32, #tpu.memory_space<vmem>>, vector<13x128xf32>
    %c8_64 = arith.constant 8 : index
    %c0_65 = arith.constant 0 : index
    %257 = vector.load %arg10[%c8_64, %c0_65] : memref<24x128xf32, #tpu.memory_space<vmem>>, vector<13x128xf32>
    %c0_66 = arith.constant 0 : index
    %c0_67 = arith.constant 0 : index
    %258 = vector.load %arg9[%c0_66, %c0_67] : memref<24x128xf32, #tpu.memory_space<vmem>>, vector<13x128xf32>
    %259 = arith.subf %258, %256 : vector<13x128xf32>
    %c0_68 = arith.constant 0 : index
    %c0_69 = arith.constant 0 : index
    %c0_70 = arith.constant 0 : index
    %260 = vector.load %arg7[%c0_68, %c0_69, %c0_70] : memref<8x13x128xf32, #tpu.memory_space<vmem>>, vector<1x13x128xf32>
    %261 = vector.shape_cast %260 : vector<1x13x128xf32> to vector<13x128xf32>
    %262 = vector.shape_cast %259 : vector<13x128xf32> to vector<1x13x128xf32>
    tpu.vector_store %arg7[%c0_68, %c0_69, %c0_70], %262 {strides = array<i32>} : memref<8x13x128xf32, #tpu.memory_space<vmem>>, vector<1x13x128xf32>,
    %c1_71 = arith.constant 1 : index
    %c0_72 = arith.constant 0 : index
    %263 = vector.load %arg9[%c1_71, %c0_72] : memref<24x128xf32, #tpu.memory_space<vmem>>, vector<13x128xf32>
    %264 = arith.subf %263, %256 : vector<13x128xf32>
    %c1_73 = arith.constant 1 : index
    %c0_74 = arith.constant 0 : index
    %c0_75 = arith.constant 0 : index
    %265 = vector.load %arg7[%c1_73, %c0_74, %c0_75] : memref<8x13x128xf32, #tpu.memory_space<vmem>>, vector<1x13x128xf32>
    %266 = vector.shape_cast %265 : vector<1x13x128xf32> to vector<13x128xf32>
    %267 = vector.shape_cast %264 : vector<13x128xf32> to vector<1x13x128xf32>
    tpu.vector_store %arg7[%c1_73, %c0_74, %c0_75], %267 {strides = array<i32>} : memref<8x13x128xf32, #tpu.memory_space<vmem>>, vector<1x13x128xf32>,
    %c2_76 = arith.constant 2 : index
    %c0_77 = arith.constant 0 : index
    %268 = vector.load %arg9[%c2_76, %c0_77] : memref<24x128xf32, #tpu.memory_space<vmem>>, vector<13x128xf32>
    %269 = arith.subf %268, %256 : vector<13x128xf32>
    %c2_78 = arith.constant 2 : index
    %c0_79 = arith.constant 0 : index
    %c0_80 = arith.constant 0 : index
    %270 = vector.load %arg7[%c2_78, %c0_79, %c0_80] : memref<8x13x128xf32, #tpu.memory_space<vmem>>, vector<1x13x128xf32>
    %271 = vector.shape_cast %270 : vector<1x13x128xf32> to vector<13x128xf32>
    %272 = vector.shape_cast %269 : vector<13x128xf32> to vector<1x13x128xf32>
    tpu.vector_store %arg7[%c2_78, %c0_79, %c0_80], %272 {strides = array<i32>} : memref<8x13x128xf32, #tpu.memory_space<vmem>>, vector<1x13x128xf32>,
    %c3_81 = arith.constant 3 : index
    %c0_82 = arith.constant 0 : index
    %273 = vector.load %arg9[%c3_81, %c0_82] : memref<24x128xf32, #tpu.memory_space<vmem>>, vector<13x128xf32>
    %274 = arith.subf %273, %256 : vector<13x128xf32>
    %c3_83 = arith.constant 3 : index
    %c0_84 = arith.constant 0 : index
    %c0_85 = arith.constant 0 : index
    %275 = vector.load %arg7[%c3_83, %c0_84, %c0_85] : memref<8x13x128xf32, #tpu.memory_space<vmem>>, vector<1x13x128xf32>
    %276 = vector.shape_cast %275 : vector<1x13x128xf32> to vector<13x128xf32>
    %277 = vector.shape_cast %274 : vector<13x128xf32> to vector<1x13x128xf32>
    tpu.vector_store %arg7[%c3_83, %c0_84, %c0_85], %277 {strides = array<i32>} : memref<8x13x128xf32, #tpu.memory_space<vmem>>, vector<1x13x128xf32>,
    %c4_86 = arith.constant 4 : index
    %c0_87 = arith.constant 0 : index
    %278 = vector.load %arg9[%c4_86, %c0_87] : memref<24x128xf32, #tpu.memory_space<vmem>>, vector<13x128xf32>
    %279 = arith.subf %278, %256 : vector<13x128xf32>
    %c4_88 = arith.constant 4 : index
    %c0_89 = arith.constant 0 : index
    %c0_90 = arith.constant 0 : index
    %280 = vector.load %arg7[%c4_88, %c0_89, %c0_90] : memref<8x13x128xf32, #tpu.memory_space<vmem>>, vector<1x13x128xf32>
    %281 = vector.shape_cast %280 : vector<1x13x128xf32> to vector<13x128xf32>
    %282 = vector.shape_cast %279 : vector<13x128xf32> to vector<1x13x128xf32>
    tpu.vector_store %arg7[%c4_88, %c0_89, %c0_90], %282 {strides = array<i32>} : memref<8x13x128xf32, #tpu.memory_space<vmem>>, vector<1x13x128xf32>,
    %c5_91 = arith.constant 5 : index
    %c0_92 = arith.constant 0 : index
    %283 = vector.load %arg9[%c5_91, %c0_92] : memref<24x128xf32, #tpu.memory_space<vmem>>, vector<13x128xf32>
    %284 = arith.subf %283, %256 : vector<13x128xf32>
    %c5_93 = arith.constant 5 : index
    %c0_94 = arith.constant 0 : index
    %c0_95 = arith.constant 0 : index
    %285 = vector.load %arg7[%c5_93, %c0_94, %c0_95] : memref<8x13x128xf32, #tpu.memory_space<vmem>>, vector<1x13x128xf32>
    %286 = vector.shape_cast %285 : vector<1x13x128xf32> to vector<13x128xf32>
    %287 = vector.shape_cast %284 : vector<13x128xf32> to vector<1x13x128xf32>
    tpu.vector_store %arg7[%c5_93, %c0_94, %c0_95], %287 {strides = array<i32>} : memref<8x13x128xf32, #tpu.memory_space<vmem>>, vector<1x13x128xf32>,
    %c6_96 = arith.constant 6 : index
    %c0_97 = arith.constant 0 : index
    %288 = vector.load %arg9[%c6_96, %c0_97] : memref<24x128xf32, #tpu.memory_space<vmem>>, vector<13x128xf32>
    %289 = arith.subf %288, %256 : vector<13x128xf32>
    %c6_98 = arith.constant 6 : index
    %c0_99 = arith.constant 0 : index
    %c0_100 = arith.constant 0 : index
    %290 = vector.load %arg7[%c6_98, %c0_99, %c0_100] : memref<8x13x128xf32, #tpu.memory_space<vmem>>, vector<1x13x128xf32>
    %291 = vector.shape_cast %290 : vector<1x13x128xf32> to vector<13x128xf32>
    %292 = vector.shape_cast %289 : vector<13x128xf32> to vector<1x13x128xf32>
    tpu.vector_store %arg7[%c6_98, %c0_99, %c0_100], %292 {strides = array<i32>} : memref<8x13x128xf32, #tpu.memory_space<vmem>>, vector<1x13x128xf32>,
    %c7_101 = arith.constant 7 : index
    %c0_102 = arith.constant 0 : index
    %293 = vector.load %arg9[%c7_101, %c0_102] : memref<24x128xf32, #tpu.memory_space<vmem>>, vector<13x128xf32>
    %294 = arith.subf %293, %256 : vector<13x128xf32>
    %c7_103 = arith.constant 7 : index
    %c0_104 = arith.constant 0 : index
    %c0_105 = arith.constant 0 : index
    %295 = vector.load %arg7[%c7_103, %c0_104, %c0_105] : memref<8x13x128xf32, #tpu.memory_space<vmem>>, vector<1x13x128xf32>
    %296 = vector.shape_cast %295 : vector<1x13x128xf32> to vector<13x128xf32>
    %297 = vector.shape_cast %294 : vector<13x128xf32> to vector<1x13x128xf32>
    tpu.vector_store %arg7[%c7_103, %c0_104, %c0_105], %297 {strides = array<i32>} : memref<8x13x128xf32, #tpu.memory_space<vmem>>, vector<1x13x128xf32>,
    %c8_106 = arith.constant 8 : index
    %c0_107 = arith.constant 0 : index
    %298 = vector.load %arg9[%c8_106, %c0_107] : memref<24x128xf32, #tpu.memory_space<vmem>>, vector<13x128xf32>
    %299 = arith.subf %298, %257 : vector<13x128xf32>
    %c0_108 = arith.constant 0 : index
    %c0_109 = arith.constant 0 : index
    %c0_110 = arith.constant 0 : index
    %300 = vector.load %arg8[%c0_108, %c0_109, %c0_110] : memref<4x13x128xf32, #tpu.memory_space<vmem>>, vector<1x13x128xf32>
    %301 = vector.shape_cast %300 : vector<1x13x128xf32> to vector<13x128xf32>
    %302 = vector.shape_cast %299 : vector<13x128xf32> to vector<1x13x128xf32>
    tpu.vector_store %arg8[%c0_108, %c0_109, %c0_110], %302 {strides = array<i32>} : memref<4x13x128xf32, #tpu.memory_space<vmem>>, vector<1x13x128xf32>,
    %c9_111 = arith.constant 9 : index
    %c0_112 = arith.constant 0 : index
    %303 = vector.load %arg9[%c9_111, %c0_112] : memref<24x128xf32, #tpu.memory_space<vmem>>, vector<13x128xf32>
    %304 = arith.subf %303, %257 : vector<13x128xf32>
    %c1_113 = arith.constant 1 : index
    %c0_114 = arith.constant 0 : index
    %c0_115 = arith.constant 0 : index
    %305 = vector.load %arg8[%c1_113, %c0_114, %c0_115] : memref<4x13x128xf32, #tpu.memory_space<vmem>>, vector<1x13x128xf32>
    %306 = vector.shape_cast %305 : vector<1x13x128xf32> to vector<13x128xf32>
    %307 = vector.shape_cast %304 : vector<13x128xf32> to vector<1x13x128xf32>
    tpu.vector_store %arg8[%c1_113, %c0_114, %c0_115], %307 {strides = array<i32>} : memref<4x13x128xf32, #tpu.memory_space<vmem>>, vector<1x13x128xf32>,
    %c10_116 = arith.constant 10 : index
    %c0_117 = arith.constant 0 : index
    %308 = vector.load %arg9[%c10_116, %c0_117] : memref<24x128xf32, #tpu.memory_space<vmem>>, vector<13x128xf32>
    %309 = arith.subf %308, %257 : vector<13x128xf32>
    %c2_118 = arith.constant 2 : index
    %c0_119 = arith.constant 0 : index
    %c0_120 = arith.constant 0 : index
    %310 = vector.load %arg8[%c2_118, %c0_119, %c0_120] : memref<4x13x128xf32, #tpu.memory_space<vmem>>, vector<1x13x128xf32>
    %311 = vector.shape_cast %310 : vector<1x13x128xf32> to vector<13x128xf32>
    %312 = vector.shape_cast %309 : vector<13x128xf32> to vector<1x13x128xf32>
    tpu.vector_store %arg8[%c2_118, %c0_119, %c0_120], %312 {strides = array<i32>} : memref<4x13x128xf32, #tpu.memory_space<vmem>>, vector<1x13x128xf32>,
    %c11_121 = arith.constant 11 : index
    %c0_122 = arith.constant 0 : index
    %313 = vector.load %arg9[%c11_121, %c0_122] : memref<24x128xf32, #tpu.memory_space<vmem>>, vector<13x128xf32>
    %314 = arith.subf %313, %257 : vector<13x128xf32>
    %c3_123 = arith.constant 3 : index
    %c0_124 = arith.constant 0 : index
    %c0_125 = arith.constant 0 : index
    %315 = vector.load %arg8[%c3_123, %c0_124, %c0_125] : memref<4x13x128xf32, #tpu.memory_space<vmem>>, vector<1x13x128xf32>
    %316 = vector.shape_cast %315 : vector<1x13x128xf32> to vector<13x128xf32>
    %317 = vector.shape_cast %314 : vector<13x128xf32> to vector<1x13x128xf32>
    tpu.vector_store %arg8[%c3_123, %c0_124, %c0_125], %317 {strides = array<i32>} : memref<4x13x128xf32, #tpu.memory_space<vmem>>, vector<1x13x128xf32>,
    return
  }
  func.func @transform_0(%arg0: i32) -> (i32, i32) {
    %c0_i32 = arith.constant 0 : i32
    %c0_i32_0 = arith.constant 0 : i32
    return %c0_i32, %arg0 : i32, i32
  }
  func.func @transform_1(%arg0: i32) -> (i32, i32) {
    %c0_i32 = arith.constant 0 : i32
    %c0_i32_0 = arith.constant 0 : i32
    return %c0_i32, %arg0 : i32, i32
  }
  func.func @transform_2(%arg0: i32) -> (i32, i32) {
    %c0_i32 = arith.constant 0 : i32
    %c0_i32_0 = arith.constant 0 : i32
    return %c0_i32, %arg0 : i32, i32
  }
  func.func @transform_3(%arg0: i32) -> (i32, i32) {
    %c0_i32 = arith.constant 0 : i32
    %c0_i32_0 = arith.constant 0 : i32
    return %c0_i32, %arg0 : i32, i32
  }
  func.func @transform_4(%arg0: i32) -> (i32, i32) {
    %c0_i32 = arith.constant 0 : i32
    %c0_i32_0 = arith.constant 0 : i32
    return %c0_i32, %arg0 : i32, i32
  }
  func.func @transform_5(%arg0: i32) -> (i32, i32) {
    %c0_i32 = arith.constant 0 : i32
    %c0_i32_0 = arith.constant 0 : i32
    return %c0_i32, %arg0 : i32, i32
  }
  func.func @transform_6(%arg0: i32) -> (i32, i32, i32) {
    %c0_i32 = arith.constant 0 : i32
    %c0_i32_0 = arith.constant 0 : i32
    %c0_i32_1 = arith.constant 0 : i32
    return %c0_i32, %c0_i32_0, %arg0 : i32, i32, i32
  }
  func.func @transform_7(%arg0: i32) -> (i32, i32, i32) {
    %c0_i32 = arith.constant 0 : i32
    %c0_i32_0 = arith.constant 0 : i32
    %c0_i32_1 = arith.constant 0 : i32
    return %c0_i32, %c0_i32_0, %arg0 : i32, i32, i32
  }
}

</mosaic_0001>

<bundles_post_ra>
// kernel: tpu_custom_call.1
= control target key start
LH: loop header
LB: loop body
LE: loop exit
PB: predicated region body
PF: predicated region fallthrough
CT: control target
= control target key end

     0   :  { %13 = vsyncpa [#allocation5], 0  ;;  %s2886_s0 = inlined_call_operand.hbm [shape: f32[24,128], index: 0, kind: input, shape index: {}]   ;;  %s2887_s1 = inlined_call_operand.hbm [shape: f32[1,128], index: 1, kind: input, shape index: {}]   ;;  %s2888_s2 = inlined_call_operand.vmem [shape: f32[1,128], index: 2, kind: input, shape index: {}]   ;;  %s2889_s3 = inlined_call_operand.hbm [shape: f32[4,128], index: 3, kind: input, shape index: {}]   ;;  %s2890_s4 = inlined_call_operand.hbm [shape: f32[24,128], index: 4, kind: output, shape index: {0}]   ;;  %s2891_s5 = inlined_call_operand.hbm [shape: f32[28,128], index: 5, kind: output, shape index: {1}]   ;;  %s2892_s6 = inlined_call_operand.vmem [shape: f32[8,13,128], index: 6, kind: output, shape index: {2}]   ;;  %s2893_s7 = inlined_call_operand.vmem [shape: f32[4,13,128], index: 7, kind: output, shape index: {3}]  }
   0x1   :  { %14 = vsyncpa [#allocation8], 0 }
   0x2   :  { %15 = vsyncpa [#allocation6], 0  ;;  %s35_s26 = sshll.u32 %s2887_s1, 4  ;;  %s36_s26 = int_to_ptr.hbm [resolvable:$true] %s35_s26 }
   0x3   :  { %16 = vsyncpa [#allocation12], 0  ;;  %s1618_s27 = smov [#allocation7]   ;;  %s21_s8 = sshll.u32 %s2886_s0, 4  ;;  %s22_s8 = int_to_ptr.hbm [resolvable:$true] %s21_s8 }
   0x4   :  { %s37_s28 = sshll.u32 %s1618_s27, 4  ;;  %s1619_s9 = smov [#allocation4]   ;;  %s38_s28 = int_to_ptr.vmem [resolvable:$true] %s37_s28 }
   0x5   :  { %40 = dma.hbm_to_vmem [thread:$0]  %s36_s26, 16, %s38_s28, [#allocation8]  }
   0x6   :  { %s23_s10 = sshll.u32 %s1619_s9, 4  ;;  %s1620_s11 = smov 128   ;;  %s24_s10 = int_to_ptr.vmem [resolvable:$true] %s23_s10 }
   0x7   :  { %s1621_s12 = smov 8   ;;  %s48_s14 = sshll.u32 %s2889_s3, 4  ;;  %s49_s14 = int_to_ptr.hbm [resolvable:$true] %s48_s14 }
   0x8   :  { %29 = dma.hbm_to_vmem [thread:$0]  %s22_s8, 384, %s24_s10, [#allocation5], %s1620_s11, %s1620_s11, %s1621_s12  }
   0x9   :  { %s1622_s15 = smov [#allocation9]  }
   0xa   :  { %s50_s16 = sshll.u32 %s1622_s15, 4  ;;  %s51_s16 = int_to_ptr.vmem [resolvable:$true] %s50_s16 }
   0xb   :  { %53 = dma.hbm_to_vmem [thread:$0]  %s49_s14, 64, %s51_s16, [#allocation8]  }
   0xc   :  { %1610 = dma.done.wait [#allocation5], 384  }
   0xd   :  { %1611 = vsyncadd [#allocation5], 4294966912 }
   0xe   :  { %1612 = dma.done.wait [#allocation8], 80  }
   0xf   :  { %1613 = vsyncadd [#allocation8], 4294967216  ;;  %v66_v0 = vld [vmem:[#allocation7] sm:$0x1]  ;;  %v86_v1 = vld [vmem:[%s2888_s2] sm:$0x1] }
  0x10   :  { %v108_v2 = vld [vmem:[#allocation9] sm:$0x1]  ;;  %v1335_v3 = vmul.f32 -1.442695, %v66_v0  ;;  %v1336_v4 = vmul.f32 -1.442695, %v86_v1 }
  0x11   :  { %v109_v5 = vmul.f32 1.442695, %v108_v2  ;;  %v111_v6 = vld [vmem:[#allocation9 + $0x1] sm:$0x1]  ;;  %v114_v7 = vld [vmem:[#allocation9 + $0x2] sm:$0x1] }
  0x12   :  { %1364 = vpow2.f32 %v1335_v3  ;;  %v112_v8 = vmul.f32 1.442695, %v111_v6  ;;  %v117_v9 = vld [vmem:[#allocation9 + $0x3] sm:$0x1]  ;;  %v115_v10 = vmul.f32 1.442695, %v114_v7 }
  0x13   :  { %1366 = vpow2.f32 %v1336_v4  ;;  %v118_v11 = vmul.f32 1.442695, %v117_v9  ;;  %v120_v62 = vld [vmem:[#allocation4] sm:$0x1]  ;;  %s1623_s2 = smov [#allocation10]   ;;  %s1295_s20 = sshll.u32 %s2890_s4, 4  ;;  %s1296_s20 = int_to_ptr.hbm [resolvable:$true] %s1295_s20 }
  0x14   :  { %1368 = vpow2.f32 %v109_v5  ;;  %s2699_s3 = sshll.u32 %s1623_s2, 4  ;;  %s1624_s9 = smov [#allocation11]   ;;  %s1294_s3 = int_to_ptr.vmem [resolvable:$true] %s2699_s3 }
  0x15   :  { %1370 = vpow2.f32 %v112_v8  ;;  %v1766_v8 = vld [vmem:[#allocation4 + $0x1] sm:$0x1]  ;;  %s1306_s10 = sshll.u32 %s1624_s9, 4  ;;  %s1308_s14 = sshll.u32 %s2891_s5, 4  ;;  %s1307_s10 = int_to_ptr.vmem [resolvable:$true] %s1306_s10  ;;  %s1309_s14 = int_to_ptr.hbm [resolvable:$true] %s1308_s14 }
  0x16   :  { %1372 = vpow2.f32 %v115_v10 }
  0x17   :  { %1374 = vpow2.f32 %v118_v11 }
  0x18   :  { %v1365_v12 = vpop.eup %1364 }
  0x19   :  { %v1367_v13 = vpop.eup %1366  ;;  %v70_v14 = vadd.f32 1.0, %v1365_v12 }
  0x1a   :  { %v1680_v15 = vpop.eup %1368  ;;  %v1682_v16 = vadd.f32 1.0, %v1367_v13 }
  0x1b   :  { %1376 = vrcp.f32 %v70_v14  ;;  %v1684_v17 = vpop.eup %1370  ;;  %v80_v19 = vand.u32 2147483647, %v70_v14  ;;  %v82_v20 = vand.u32 2147483648, %v70_v14  ;;  %v130_v22 = vand.u32 2147483647, %v1680_v15 }
  0x1c   :  { %1378 = vrcp.f32 %v1682_v16  ;;  %v1687_v18 = vpop.eup %1372  ;;  %v132_v23 = vand.u32 2147483648, %v1680_v15  ;;  %vm76_vm0 = vweird.f32 %v70_v14  ;;  %v146_v25 = vand.u32 2147483647, %v1684_v17 }
  0x1d   :  { %1380 = vrcp.f32 %v1680_v15  ;;  %v1690_v21 = vpop.eup %1374  ;;  %v148_v26 = vand.u32 2147483648, %v1684_v17  ;;  %vm1700_vm1 = vcmp.eq.f32.partialorder %v80_v19, 8.507059e+37  ;;  %v83_v30 = vor.u32 1.1754944e-38, %v82_v20 }
  0x1e   :  { %1382 = vrcp.f32 %v1684_v17  ;;  %vm126_vm2 = vweird.f32 %v1680_v15  ;;  %vm1706_vm3 = vcmp.eq.f32.partialorder %v130_v22, 8.507059e+37  ;;  %vm142_vm4 = vweird.f32 %v1684_v17 }
  0x1f   :  { %1384 = vrcp.f32 %v1687_v18  ;;  %v164_v33 = vand.u32 2147483648, %v1687_v18  ;;  %v133_v36 = vor.u32 1.1754944e-38, %v132_v23  ;;  %vm1715_vm6 = vcmp.eq.f32.partialorder %v146_v25, 8.507059e+37 }
  0x20   :  { %1386 = vrcp.f32 %v1690_v21  ;;  %v149_v40 = vor.u32 1.1754944e-38, %v148_v26  ;;  %vm158_vm7 = vweird.f32 %v1687_v18  ;;  %v162_v47 = vand.u32 2147483647, %v1687_v18 }
  0x21   :  { %v1377_v24 = vpop.eup %1376  ;;  %v165_v48 = vor.u32 1.1754944e-38, %v164_v33  ;;  %vm174_vm10 = vweird.f32 %v1690_v21  ;;  %v180_v60 = vand.u32 2147483648, %v1690_v21  ;;  %v178_v6 = vand.u32 2147483647, %v1690_v21 }
  0x22   :  { %v1698_v27 = vpop.eup %1378  ;;  %v72_v28 = vmul.f32 %v1377_v24, %v70_v14  ;;  %vm77_vm5 = vweird.f32 %v1377_v24  ;;  %v1774_v14 = vld [vmem:[#allocation4 + $0x2] sm:$0x1] }
  0x23   :  { %v1381_v31 = vpop.eup %1380  ;;  %v92_v38 = vmul.f32 %v1698_v27, %v1682_v16  ;;  %vm1722_vm9 = vmor %vm76_vm0, %vm77_vm5  ;;  %vm97_vm5 = vweird.f32 %v1698_v27 }
  0x24   :  { %v73_v34 = vsub.f32 1.0, %v72_v28  ;;  %v122_v35 = vmul.f32 %v1381_v31, %v1680_v15  ;;  %v1383_v37 = vpop.eup %1382  ;;  %vm127_vm8 = vweird.f32 %v1381_v31 }
  0x25   :  { %v1385_v41 = vpop.eup %1384  ;;  %v138_v44 = vmul.f32 %v1383_v37, %v1684_v17  ;;  %vm143_vm11 = vweird.f32 %v1383_v37  ;;  %v93_v53 = vsub.f32 1.0, %v92_v38  ;;  %vm1731_vm12 = vmor %vm126_vm2, %vm127_vm8 }
  0x26   :  { %v74_v42 = vmul.f32 %v1377_v24, %v73_v34  ;;  %v123_v43 = vsub.f32 1.0, %v122_v35  ;;  %v154_v46 = vmul.f32 %v1385_v41, %v1687_v18  ;;  %v1387_v49 = vpop.eup %1386  ;;  %vm159_vm13 = vweird.f32 %v1385_v41  ;;  %vm1745_vm14 = vmor %vm142_vm4, %vm143_vm11  ;;  %v1799_v35 = vld [vmem:[#allocation4 + $0x3] sm:$0x1] }
  0x27   :  { %v139_v52 = vsub.f32 1.0, %v138_v44  ;;  %v170_v56 = vmul.f32 %v1387_v49, %v1690_v21  ;;  %vm175_vm15 = vweird.f32 %v1387_v49  ;;  %vm1757_vm0 = vmor %vm158_vm7, %vm159_vm13  ;;  %v94_v11 = vmul.f32 %v1698_v27, %v93_v53 }
  0x28   :  { %v75_v50 = vadd.f32 %v1377_v24, %v74_v42  ;;  %v124_v51 = vmul.f32 %v1381_v31, %v123_v43  ;;  %v155_v55 = vsub.f32 1.0, %v154_v46  ;;  %vm1779_vm2 = vmor %vm174_vm10, %vm175_vm15  ;;  %vm96_vm4 = vweird.f32 %v1682_v16 }
  0x29   :  { %v140_v59 = vmul.f32 %v1383_v37, %v139_v52  ;;  %v171_v1 = vsub.f32 1.0, %v170_v56  ;;  %v95_v33 = vadd.f32 %v1698_v27, %v94_v11  ;;  %v100_v34 = vand.u32 2147483647, %v1682_v16  ;;  %v1827_v52 = vld [vmem:[#allocation4 + $0x4] sm:$0x1] }
  0x2a   :  { %v79_v57 = vsel %vm1722_vm9, %v1377_v24, %v75_v50  ;;  %v125_v58 = vadd.f32 %v1381_v31, %v124_v51  ;;  %v156_v0 = vmul.f32 %v1385_v41, %v155_v55  ;;  %v181_v24 = vor.u32 1.1754944e-38, %v180_v60 }
  0x2b   :  { %v1741_v61 = vsel %vm1700_vm1, %v83_v30, %v79_v57  ;;  %v141_v4 = vadd.f32 %v1383_v37, %v140_v59  ;;  %vm163_vm1 = vcmp.eq.f32.partialorder %v162_v47, 8.507059e+37  ;;  %v172_v10 = vmul.f32 %v1387_v49, %v171_v1 }
  0x2c   :  { %v1750_v2 = vsub.f32 1.0, %v1741_v61  ;;  %v129_v3 = vsel %vm1731_vm12, %v1381_v31, %v125_v58  ;;  %v157_v9 = vadd.f32 %v1385_v41, %v156_v0  ;;  %v102_v31 = vand.u32 2147483648, %v1682_v16 }
  0x2d   :  { %v1764_v7 = vsel %vm1706_vm3, %v133_v36, %v129_v3  ;;  %v145_v13 = vsel %vm1745_vm14, %v1383_v37, %v141_v4  ;;  %v173_v23 = vadd.f32 %v1387_v49, %v172_v10  ;;  %vm179_vm3 = vcmp.eq.f32.partialorder %v178_v6, 8.507059e+37 }
  0x2e   :  { %v1770_v12 = vmul.f32 %v1764_v7, %v120_v62  ;;  %v150_v20 = vsel %vm1715_vm6, %v149_v40, %v145_v13  ;;  %v161_v22 = vsel %vm1757_vm0, %v1385_v41, %v157_v9  ;;  %vm98_vm6 = vmor %vm96_vm4, %vm97_vm5  ;;  %v103_v39 = vor.u32 1.1754944e-38, %v102_v31 }
  0x2f   :  { %v151_v25 = vmul.f32 %v150_v20, %v1766_v8  ;;  %v166_v26 = vsel %vm163_vm1, %v165_v48, %v161_v22  ;;  %v177_v30 = vsel %vm1779_vm2, %v1387_v49, %v173_v23  ;;  %v99_v41 = vsel %vm98_vm6, %v1698_v27, %v95_v33 }
  0x30   :  { %v187_v28 = vmul.f32 %v1770_v12, %v1750_v2  ;;  %v167_v29 = vmul.f32 %v166_v26, %v1774_v14  ;;  %v182_v36 = vsel %vm179_vm3, %v181_v24, %v177_v30  ;;  %vm101_vm7 = vcmp.eq.f32.partialorder %v100_v34, 8.507059e+37 }
  0x31   :  { %v186_v32 = vmul.f32 %v151_v25, %v1741_v61  ;;  %v183_v40 = vmul.f32 %v182_v36, %v1799_v35  ;;  %v1811_v43 = vsel %vm101_vm7, %v103_v39, %v99_v41  ;;  %v282_v0 = vrot.slane %v1684_v17, 7 }
  0x32   :  { %v223_v38 = vmul.f32 %v167_v29, %v1741_v61  ;;  %v1818_v47 = vsub.f32 1.0, %v1811_v43  ;;  %v285_v1 = vrot.slane %v1687_v18, 6  ;;  %v185_v3 = vmul.f32 %v1827_v52, %v1764_v7 }
  0x33   :  { %v1801_v37 = vadd.f32 %v187_v28, %v186_v32  ;;  %v260_v44 = vmul.f32 %v183_v40, %v1741_v61  ;;  %vm302_vm14 = vcmask 1040384   ;;  %vm304_vm0 = vcmask 1041408  }
  0x34   :  { %v205_v56 = vmul.f32 %v1684_v17, %v1818_v47  ;;  %v288_v17 = vrot.slane %v1690_v21, 5  ;;  %v333_v10 = vmul.f32 %v185_v3, %v1741_v61  ;;  %v303_v24 = vsel %vm302_vm14, %v1680_v15, %v282_v0 }
  0x35   :  { %1388 = vrcp.f32 %v1801_v37  ;;  %v224_v42 = vmul.f32 %v1801_v37, %v1750_v2  ;;  %v198_v48 = vand.u32 2147483647, %v1801_v37  ;;  %v200_v49 = vand.u32 2147483648, %v1801_v37 }
  0x36   :  { %vm194_vm8 = vweird.f32 %v1801_v37  ;;  %v305_v32 = vsel %vm304_vm0, %v303_v24, %v285_v1  ;;  %vm306_vm4 = vcmask 1042432   ;;  %v242_v36 = vmul.f32 %v1687_v18, %v1818_v47 }
  0x37   :  { %v1809_v16 = vadd.f32 %v224_v42, %v223_v38  ;;  %vm1829_vm10 = vcmp.eq.f32.partialorder %v198_v48, 8.507059e+37  ;;  %v201_v59 = vor.u32 1.1754944e-38, %v200_v49  ;;  %v291_v41 = vrot.slane %v1680_v15, 4 }
  0x38   :  { %vm308_vm6 = vcmask 1043456  }
  0x39   :  { %1390 = vrcp.f32 %v1809_v16  ;;  %v261_v46 = vmul.f32 %v1809_v16, %v1750_v2  ;;  %v235_v57 = vand.u32 2147483647, %v1809_v16  ;;  %vm231_vm12 = vweird.f32 %v1809_v16 }
  0x3a   :  { %v237_v62 = vand.u32 2147483648, %v1809_v16 }
  0x3b   :  { %v1389_v45 = vpop.eup %1388  ;;  %v1823_v50 = vadd.f32 %v261_v46, %v260_v44  ;;  %vm1851_vm15 = vcmp.eq.f32.partialorder %v235_v57, 8.507059e+37  ;;  %v307_v44 = vsel %vm306_vm4, %v305_v32, %v288_v17  ;;  %v352_v32 = vmul.f32 %v1680_v15, %v1818_v47 }
  0x3c   :  { %v190_v27 = vmul.f32 %v1389_v45, %v1801_v37  ;;  %vm195_vm9 = vweird.f32 %v1389_v45  ;;  %v238_v19 = vor.u32 1.1754944e-38, %v237_v62  ;;  %v309_v49 = vsel %vm308_vm6, %v307_v44, %v291_v41 }
  0x3d   :  { %1392 = vrcp.f32 %v1823_v50  ;;  %vm1836_vm11 = vmor %vm194_vm8, %vm195_vm9  ;;  %v334_v5 = vmul.f32 %v1823_v50, %v1750_v2  ;;  %vm268_vm2 = vweird.f32 %v1823_v50  ;;  %v272_v28 = vand.u32 2147483647, %v1823_v50 }
  0x3e   :  { %v191_v51 = vsub.f32 1.0, %v190_v27  ;;  %vm310_vm8 = vcmask 1044480   ;;  %vm312_vm9 = vcmask 1045504  }
  0x3f   :  { %v1391_v53 = vpop.eup %1390  ;;  %v1869_v25 = vadd.f32 %v334_v5, %v333_v10  ;;  %vm273_vm7 = vcmp.eq.f32.partialorder %v272_v28, 8.507059e+37 }
  0x40   :  { %v192_v54 = vmul.f32 %v1389_v45, %v191_v51  ;;  %v227_v60 = vmul.f32 %v1391_v53, %v1809_v16  ;;  %vm232_vm13 = vweird.f32 %v1391_v53 }
  0x41   :  { %vm1862_vm1 = vmor %vm231_vm12, %vm232_vm13  ;;  %1394 = vrcp.f32 %v1869_v25 }
  0x42   :  { %v193_v63 = vadd.f32 %v1389_v45, %v192_v54  ;;  %v228_v4 = vsub.f32 1.0, %v227_v60  ;;  %v347_v60 = vand.u32 2147483648, %v1869_v25 }
  0x43   :  { %v1393_v11 = vpop.eup %1392 }
  0x44   :  { %v197_v6 = vsel %vm1836_vm11, %v1389_v45, %v193_v63  ;;  %v229_v13 = vmul.f32 %v1391_v53, %v228_v4  ;;  %v264_v23 = vmul.f32 %v1393_v11, %v1823_v50  ;;  %vm269_vm3 = vweird.f32 %v1393_v11 }
  0x45   :  { %v202_v7 = vsel %vm1829_vm10, %v201_v59, %v197_v6  ;;  %vm270_vm5 = vmor %vm268_vm2, %vm269_vm3  ;;  %vm314_vm10 = vcmask 1046528   ;;  %vm341_vm11 = vweird.f32 %v1869_v25  ;;  %v348_v9 = vor.u32 1.1754944e-38, %v347_v60 }
  0x46   :  { %v203_v20 = vmul.f32 %v202_v7, %v1766_v8  ;;  %v230_v26 = vadd.f32 %v1391_v53, %v229_v13  ;;  %v274_v8 = vand.u32 2147483648, %v1823_v50  ;;  %v265_v30 = vsub.f32 1.0, %v264_v23 }
  0x47   :  { %v1395_v46 = vpop.eup %1394 }
  0x48   :  { %v204_v29 = vmul.f32 %v203_v20, %v1811_v43  ;;  %v234_v31 = vsel %vm1862_vm1, %v1391_v53, %v230_v26  ;;  %v266_v38 = vmul.f32 %v1393_v11, %v265_v30  ;;  %v275_v40 = vor.u32 1.1754944e-38, %v274_v8  ;;  %v1932_v8 = vld [vmem:[#allocation4 + $0x5] sm:$0x1] }
  0x49   :  { %v239_v34 = vsel %vm1851_vm15, %v238_v19, %v234_v31  ;;  %v279_v53 = vmul.f32 %v1690_v21, %v1818_v47  ;;  %v337_v54 = vmul.f32 %v1395_v46, %v1869_v25  ;;  %vm342_vm12 = vweird.f32 %v1395_v46 }
  0x4a   :  { %v1879_v33 = vadd.f32 %v205_v56, %v204_v29  ;;  %v240_v39 = vmul.f32 %v239_v34, %v1774_v14  ;;  %v267_v42 = vadd.f32 %v1393_v11, %v266_v38  ;;  %v345_v21 = vand.u32 2147483647, %v1869_v25  ;;  %vm1916_vm1 = vmor %vm341_vm11, %vm342_vm12 }
  0x4b   :  { %v338_v59 = vsub.f32 1.0, %v337_v54 }
  0x4c   :  { %1396 = vrcp.f32 %v1879_v33  ;;  %v241_v45 = vmul.f32 %v240_v39, %v1811_v43  ;;  %v271_v18 = vsel %vm270_vm5, %v1393_v11, %v267_v42  ;;  %v294_v27 = vperm.slane %v1879_v33, 0 }
  0x4d   :  { %v276_v48 = vsel %vm273_vm7, %v275_v40, %v271_v18  ;;  %vm213_vm13 = vweird.f32 %v1879_v33  ;;  %v219_v63 = vand.u32 2147483648, %v1879_v33  ;;  %v339_v0 = vmul.f32 %v1395_v46, %v338_v59  ;;  %v1963_v59 = vld [vmem:[#allocation4 + $0x7] sm:$0x1] }
  0x4e   :  { %v1893_v14 = vadd.f32 %v242_v36, %v241_v45  ;;  %v277_v51 = vmul.f32 %v276_v48, %v1799_v35  ;;  %v311_v58 = vsel %vm310_vm8, %v309_v49, %v294_v27  ;;  %v217_v4 = vand.u32 2147483647, %v1879_v33  ;;  %v1952_v27 = vld [vmem:[#allocation4 + $0x6] sm:$0x1] }
  0x4f   :  { %v340_v11 = vadd.f32 %v1395_v46, %v339_v0  ;;  %vm346_vm2 = vcmp.eq.f32.partialorder %v345_v21, 8.507059e+37  ;;  %v220_v20 = vor.u32 1.1754944e-38, %v219_v63  ;;  %v371_v40 = vmul.f32 %v1869_v25, %v1750_v2 }
  0x50   :  { %1398 = vrcp.f32 %v1893_v14  ;;  %v297_v55 = vperm.slane %v1893_v14, 0  ;;  %v278_v57 = vmul.f32 %v277_v51, %v1811_v43  ;;  %v254_v22 = vand.u32 2147483647, %v1893_v14 }
  0x51   :  { %vm218_vm5 = vcmp.eq.f32.partialorder %v217_v4, 8.507059e+37  ;;  %v256_v24 = vand.u32 2147483648, %v1893_v14  ;;  %v344_v26 = vsel %vm1916_vm1, %v1395_v46, %v340_v11  ;;  %vm250_vm7 = vweird.f32 %v1893_v14 }
  0x52   :  { %v1397_v56 = vpop.eup %1396  ;;  %v1908_v62 = vadd.f32 %v279_v53, %v278_v57  ;;  %v313_v3 = vsel %vm312_vm9, %v311_v58, %v297_v55  ;;  %v349_v29 = vsel %vm346_vm2, %v348_v9, %v344_v26  ;;  %vm1940_vm12 = vcmp.eq.f32.partialorder %v254_v22, 8.507059e+37 }
  0x53   :  { %v209_v35 = vmul.f32 %v1397_v56, %v1879_v33  ;;  %vm214_vm15 = vweird.f32 %v1397_v56  ;;  %v350_v31 = vmul.f32 %v349_v29, %v1827_v52  ;;  %v257_v44 = vor.u32 1.1754944e-38, %v256_v24 }
  0x54   :  { %v300_v5 = vperm.slane %v1908_v62, 0  ;;  %1400 = vrcp.f32 %v1908_v62  ;;  %vm1924_vm3 = vmor %vm213_vm13, %vm214_vm15  ;;  %vm323_vm15 = vweird.f32 %v1908_v62  ;;  %v327_v15 = vand.u32 2147483647, %v1908_v62 }
  0x55   :  { %v210_v1 = vsub.f32 1.0, %v209_v35  ;;  %v351_v52 = vmul.f32 %v350_v31, %v1811_v43  ;;  %v329_v46 = vand.u32 2147483648, %v1908_v62 }
  0x56   :  { %v1399_v17 = vpop.eup %1398  ;;  %v315_v13 = vsel %vm314_vm10, %v313_v3, %v300_v5 }
  0x57   :  { %v211_v10 = vmul.f32 %v1397_v56, %v210_v1  ;;  %v246_v7 = vmul.f32 %v1399_v17, %v1893_v14  ;;  %316 = vst [vmem:[#allocation11] sm:$0xff] %v315_v13  ;;  %vm251_vm11 = vweird.f32 %v1399_v17  ;;  %v1954_v48 = vadd.f32 %v352_v32, %v351_v52 }
  0x58   :  { %vm252_vm13 = vmor %vm250_vm7, %vm251_vm11 }
  0x59   :  { %v212_v23 = vadd.f32 %v1397_v56, %v211_v10  ;;  %v247_v28 = vsub.f32 1.0, %v246_v7  ;;  %1402 = vrcp.f32 %v1954_v48  ;;  %v366_v4 = vand.u32 2147483648, %v1954_v48 }
  0x5a   :  { %v1401_v34 = vpop.eup %1400  ;;  %v364_v10 = vand.u32 2147483647, %v1954_v48 }
  0x5b   :  { %v216_v30 = vsel %vm1924_vm3, %v1397_v56, %v212_v23  ;;  %v248_v38 = vmul.f32 %v1399_v17, %v247_v28  ;;  %v319_v41 = vmul.f32 %v1401_v34, %v1908_v62  ;;  %vm324_vm1 = vweird.f32 %v1401_v34  ;;  %v1986_v28 = vld [vmem:[#allocation4 + $0x8] sm:$0x1] }
  0x5c   :  { %v221_v36 = vsel %vm218_vm5, %v220_v20, %v216_v30  ;;  %vm325_vm2 = vmor %vm323_vm15, %vm324_vm1  ;;  %v330_v56 = vor.u32 1.1754944e-38, %v329_v46  ;;  %vm328_vm3 = vcmp.eq.f32.partialorder %v327_v15, 8.507059e+37  ;;  %vm360_vm5 = vweird.f32 %v1954_v48 }
  0x5d   :  { %v222_v42 = vmul.f32 %v221_v36, %v1932_v8  ;;  %v249_v45 = vadd.f32 %v1399_v17, %v248_v38  ;;  %v320_v18 = vsub.f32 1.0, %v319_v41  ;;  %v367_v19 = vor.u32 1.1754944e-38, %v366_v4 }
  0x5e   :  { %vm365_vm15 = vcmp.eq.f32.partialorder %v364_v10, 8.507059e+37 }
  0x5f   :  { %v370_v49 = vmul.f32 %v222_v42, %v1741_v61  ;;  %v253_v51 = vsel %vm252_vm13, %v1399_v17, %v249_v45  ;;  %v321_v54 = vmul.f32 %v1401_v34, %v320_v18  ;;  %v1403_v0 = vpop.eup %1402 }
  0x60   :  { %v258_v53 = vsel %vm1940_vm12, %v257_v44, %v253_v51  ;;  %v356_v3 = vmul.f32 %v1403_v0, %v1954_v48  ;;  %vm361_vm7 = vweird.f32 %v1403_v0 }
  0x61   :  { %v259_v55 = vmul.f32 %v258_v53, %v1952_v27  ;;  %v1961_v57 = vadd.f32 %v371_v40, %v370_v49  ;;  %v322_v58 = vadd.f32 %v1401_v34, %v321_v54  ;;  %vm362_vm12 = vmor %vm360_vm5, %vm361_vm7  ;;  %v389_v49 = vmul.f32 %v1879_v33, %v1818_v47 }
  0x62   :  { %v357_v17 = vsub.f32 1.0, %v356_v3 }
  0x63   :  { %1404 = vrcp.f32 %v1961_v57  ;;  %v326_v60 = vsel %vm325_vm2, %v1401_v34, %v322_v58  ;;  %v407_v35 = vmul.f32 %v259_v55, %v1741_v61  ;;  %v408_v63 = vmul.f32 %v1961_v57, %v1750_v2 }
  0x64   :  { %v331_v21 = vsel %vm328_vm3, %v330_v56, %v326_v60  ;;  %v358_v13 = vmul.f32 %v1403_v0, %v357_v17  ;;  %vm378_vm11 = vweird.f32 %v1961_v57  ;;  %v384_v20 = vand.u32 2147483648, %v1961_v57 }
  0x65   :  { %v332_v1 = vmul.f32 %v331_v21, %v1963_v59  ;;  %v1972_v5 = vadd.f32 %v408_v63, %v407_v35  ;;  %v382_v23 = vand.u32 2147483647, %v1961_v57 }
  0x66   :  { %v359_v26 = vadd.f32 %v1403_v0, %v358_v13  ;;  %v385_v32 = vor.u32 1.1754944e-38, %v384_v20 }
  0x67   :  { %v444_v6 = vmul.f32 %v332_v1, %v1741_v61  ;;  %1406 = vrcp.f32 %v1972_v5  ;;  %v445_v7 = vmul.f32 %v1972_v5, %v1750_v2  ;;  %vm383_vm2 = vcmp.eq.f32.partialorder %v382_v23, 8.507059e+37 }
  0x68   :  { %v363_v31 = vsel %vm362_vm12, %v1403_v0, %v359_v26  ;;  %v419_v40 = vand.u32 2147483647, %v1972_v5  ;;  %v421_v41 = vand.u32 2147483648, %v1972_v5  ;;  %vm415_vm3 = vweird.f32 %v1972_v5 }
  0x69   :  { %v1405_v9 = vpop.eup %1404  ;;  %v1984_v24 = vadd.f32 %v445_v7, %v444_v6  ;;  %v368_v34 = vsel %vm365_vm15, %v367_v19, %v363_v31  ;;  %v426_v6 = vmul.f32 %v1893_v14, %v1818_v47 }
  0x6a   :  { %v374_v11 = vmul.f32 %v1405_v9, %v1961_v57  ;;  %vm379_vm13 = vweird.f32 %v1405_v9  ;;  %v369_v39 = vmul.f32 %v368_v34, %v1986_v28  ;;  %v422_v54 = vor.u32 1.1754944e-38, %v421_v41 }
  0x6b   :  { %1408 = vrcp.f32 %v1984_v24  ;;  %vm380_vm1 = vmor %vm378_vm11, %vm379_vm13  ;;  %v511_v42 = vmul.f32 %v1984_v24, %v1750_v2  ;;  %vm420_vm11 = vcmp.eq.f32.partialorder %v419_v40, 8.507059e+37  ;;  %vm481_vm12 = vweird.f32 %v1984_v24 }
  0x6c   :  { %v375_v22 = vsub.f32 1.0, %v374_v11  ;;  %v510_v15 = vmul.f32 %v369_v39, %v1741_v61  ;;  %v485_v33 = vand.u32 2147483647, %v1984_v24 }
  0x6d   :  { %v1407_v30 = vpop.eup %1406 }
  0x6e   :  { %v376_v29 = vmul.f32 %v1405_v9, %v375_v22  ;;  %v411_v38 = vmul.f32 %v1407_v30, %v1972_v5  ;;  %vm416_vm5 = vweird.f32 %v1407_v30  ;;  %v2005_v56 = vadd.f32 %v511_v42, %v510_v15  ;;  %v2051_v15 = vld [vmem:[#allocation4 + $0x9] sm:$0x1] }
  0x6f   :  { %vm2000_vm7 = vmor %vm415_vm3, %vm416_vm5 }
  0x70   :  { %v377_v36 = vadd.f32 %v1405_v9, %v376_v29  ;;  %v412_v52 = vsub.f32 1.0, %v411_v38  ;;  %1410 = vrcp.f32 %v2005_v56  ;;  %v524_v26 = vand.u32 2147483648, %v2005_v56 }
  0x71   :  { %v1409_v46 = vpop.eup %1408 }
  0x72   :  { %v381_v44 = vsel %vm380_vm1, %v1405_v9, %v377_v36  ;;  %v413_v51 = vmul.f32 %v1407_v30, %v412_v52  ;;  %v477_v55 = vmul.f32 %v1409_v46, %v1984_v24  ;;  %vm482_vm13 = vweird.f32 %v1409_v46 }
  0x73   :  { %v386_v45 = vsel %vm383_vm2, %v385_v32, %v381_v44  ;;  %vm483_vm15 = vmor %vm481_vm12, %vm482_vm13  ;;  %vm486_vm1 = vcmp.eq.f32.partialorder %v485_v33, 8.507059e+37  ;;  %vm518_vm2 = vweird.f32 %v2005_v56  ;;  %v525_v40 = vor.u32 1.1754944e-38, %v524_v26 }
  0x74   :  { %v387_v18 = vmul.f32 %v386_v45, %v1932_v8  ;;  %v414_v60 = vadd.f32 %v1407_v30, %v413_v51  ;;  %v487_v8 = vand.u32 2147483648, %v1984_v24  ;;  %v478_v35 = vsub.f32 1.0, %v477_v55 }
  0x76   :  { %v388_v58 = vmul.f32 %v387_v18, %v1811_v43  ;;  %v418_v63 = vsel %vm2000_vm7, %v1407_v30, %v414_v60  ;;  %v479_v1 = vmul.f32 %v1409_v46, %v478_v35  ;;  %v488_v3 = vor.u32 1.1754944e-38, %v487_v8  ;;  %v1411_v17 = vpop.eup %1410 }
  0x77   :  { %v423_v0 = vsel %vm420_vm11, %v422_v54, %v418_v63  ;;  %v514_v13 = vmul.f32 %v1411_v17, %v2005_v56  ;;  %vm519_vm3 = vweird.f32 %v1411_v17  ;;  %v529_v18 = vmul.f32 %v1954_v48, %v1818_v47 }
  0x78   :  { %v2012_v21 = vadd.f32 %v389_v49, %v388_v58  ;;  %v424_v4 = vmul.f32 %v423_v0, %v1952_v27  ;;  %v480_v9 = vadd.f32 %v1409_v46, %v479_v1  ;;  %v492_v27 = vmul.f32 %v1908_v62, %v1818_v47  ;;  %vm2040_vm11 = vmor %vm518_vm2, %vm519_vm3 }
  0x79   :  { %v515_v23 = vsub.f32 1.0, %v514_v13  ;;  %v548_v35 = vmul.f32 %v2005_v56, %v1750_v2 }
  0x7a   :  { %1412 = vrcp.f32 %v2012_v21  ;;  %v425_v10 = vmul.f32 %v424_v4, %v1811_v43  ;;  %v484_v11 = vsel %vm483_vm15, %v1409_v46, %v480_v9  ;;  %v403_v29 = vand.u32 2147483648, %v2012_v21 }
  0x7b   :  { %v489_v7 = vsel %vm486_vm1, %v488_v3, %v484_v11  ;;  %v516_v31 = vmul.f32 %v1411_v17, %v515_v23  ;;  %vm397_vm5 = vweird.f32 %v2012_v21  ;;  %v401_v62 = vand.u32 2147483647, %v2012_v21 }
  0x7c   :  { %v2022_v19 = vadd.f32 %v426_v6, %v425_v10  ;;  %v490_v20 = vmul.f32 %v489_v7, %v1963_v59  ;;  %v522_v59 = vand.u32 2147483647, %v2005_v56  ;;  %v404_v42 = vor.u32 1.1754944e-38, %v403_v29  ;;  %v2078_v10 = vld [vmem:[#allocation4 + $0xa] sm:$0x1] }
  0x7d   :  { %v517_v36 = vadd.f32 %v1411_v17, %v516_v31  ;;  %vm402_vm15 = vcmp.eq.f32.partialorder %v401_v62, 8.507059e+37 }
  0x7e   :  { %1414 = vrcp.f32 %v2022_v19  ;;  %v491_v30 = vmul.f32 %v490_v20, %v1811_v43  ;;  %vm523_vm13 = vcmp.eq.f32.partialorder %v522_v59, 8.507059e+37  ;;  %vm434_vm1 = vweird.f32 %v2022_v19 }
  0x7f   :  { %v521_v45 = vsel %vm2040_vm11, %v1411_v17, %v517_v36  ;;  %v438_v51 = vand.u32 2147483647, %v2022_v19  ;;  %v440_v53 = vand.u32 2147483648, %v2022_v19 }
  0x80   :  { %v1413_v22 = vpop.eup %1412  ;;  %v2036_v34 = vadd.f32 %v492_v27, %v491_v30  ;;  %v526_v54 = vsel %vm523_vm13, %v525_v40, %v521_v45  ;;  %v2090_v30 = vld [vmem:[#allocation4 + $0xb] sm:$0x1] }
  0x81   :  { %v393_v14 = vmul.f32 %v1413_v22, %v2012_v21  ;;  %vm398_vm7 = vweird.f32 %v1413_v22  ;;  %v527_v60 = vmul.f32 %v526_v54, %v1986_v28  ;;  %v441_v3 = vor.u32 1.1754944e-38, %v440_v53 }
  0x82   :  { %vm2044_vm12 = vmor %vm397_vm5, %vm398_vm7  ;;  %1416 = vrcp.f32 %v2036_v34  ;;  %vm439_vm5 = vcmp.eq.f32.partialorder %v438_v51, 8.507059e+37  ;;  %vm500_vm7 = vweird.f32 %v2036_v34  ;;  %v506_v9 = vand.u32 2147483648, %v2036_v34 }
  0x83   :  { %v394_v32 = vsub.f32 1.0, %v393_v14  ;;  %v528_v0 = vmul.f32 %v527_v60, %v1811_v43  ;;  %v504_v7 = vand.u32 2147483647, %v2036_v34  ;;  %v566_v60 = vmul.f32 %v2012_v21, %v1818_v47 }
  0x84   :  { %v1415_v44 = vpop.eup %1414  ;;  %v507_v14 = vor.u32 1.1754944e-38, %v506_v9 }
  0x85   :  { %v395_v39 = vmul.f32 %v1413_v22, %v394_v32  ;;  %v430_v46 = vmul.f32 %v1415_v44, %v2022_v19  ;;  %vm435_vm2 = vweird.f32 %v1415_v44  ;;  %v2076_v17 = vadd.f32 %v529_v18, %v528_v0 }
  0x86   :  { %vm2068_vm3 = vmor %vm434_vm1, %vm435_vm2  ;;  %vm505_vm13 = vcmp.eq.f32.partialorder %v504_v7, 8.507059e+37 }
  0x87   :  { %v396_v52 = vadd.f32 %v1413_v22, %v395_v39  ;;  %v431_v58 = vsub.f32 1.0, %v430_v46  ;;  %1418 = vrcp.f32 %v2076_v17  ;;  %vm537_vm2 = vweird.f32 %v2076_v17 }
  0x88   :  { %v1417_v33 = vpop.eup %1416  ;;  %v541_v54 = vand.u32 2147483647, %v2076_v17 }
  0x89   :  { %v400_v49 = vsel %vm2044_vm12, %v1413_v22, %v396_v52  ;;  %v432_v63 = vmul.f32 %v1415_v44, %v431_v58  ;;  %v496_v4 = vmul.f32 %v1417_v33, %v2036_v34  ;;  %vm501_vm11 = vweird.f32 %v1417_v33 }
  0x8a   :  { %v405_v55 = vsel %vm402_vm15, %v404_v42, %v400_v49  ;;  %vm502_vm12 = vmor %vm500_vm7, %vm501_vm11  ;;  %v543_v49 = vand.u32 2147483648, %v2076_v17 }
  0x8b   :  { %v406_v8 = vmul.f32 %v405_v55, %v2051_v15  ;;  %v433_v6 = vadd.f32 %v1415_v44, %v432_v63  ;;  %v497_v11 = vsub.f32 1.0, %v496_v4  ;;  %v603_v55 = vmul.f32 %v2022_v19, %v1818_v47 }
  0x8d   :  { %v547_v28 = vmul.f32 %v406_v8, %v1741_v61  ;;  %v437_v20 = vsel %vm2068_vm3, %v1415_v44, %v433_v6  ;;  %v498_v27 = vmul.f32 %v1417_v33, %v497_v11  ;;  %v1419_v32 = vpop.eup %1418 }
  0x8e   :  { %v442_v22 = vsel %vm439_vm5, %v441_v3, %v437_v20  ;;  %v533_v41 = vmul.f32 %v1419_v32, %v2076_v17  ;;  %vm538_vm3 = vweird.f32 %v1419_v32  ;;  %v643_v3 = vperm.slane %v2012_v21, 0  ;;  %v2131_v21 = vld [vmem:[#allocation4 + $0xc] sm:$0x1] }
  0x8f   :  { %v2081_v13 = vadd.f32 %v548_v35, %v547_v28  ;;  %v443_v23 = vmul.f32 %v442_v22, %v2078_v10  ;;  %v499_v29 = vadd.f32 %v1417_v33, %v498_v27  ;;  %vm2123_vm11 = vmor %vm537_vm2, %vm538_vm3  ;;  %v544_v28 = vor.u32 1.1754944e-38, %v543_v49 }
  0x90   :  { %v534_v53 = vsub.f32 1.0, %v533_v41  ;;  %v646_v20 = vperm.slane %v2022_v19, 0 }
  0x91   :  { %1420 = vrcp.f32 %v2081_v13  ;;  %v585_v26 = vmul.f32 %v2081_v13, %v1750_v2  ;;  %v584_v31 = vmul.f32 %v443_v23, %v1741_v61  ;;  %v503_v59 = vsel %vm502_vm12, %v1417_v33, %v499_v29 }
  0x92   :  { %v508_v62 = vsel %vm505_vm13, %v507_v14, %v503_v59  ;;  %v561_v42 = vand.u32 2147483648, %v2081_v13  ;;  %vm555_vm15 = vweird.f32 %v2081_v13  ;;  %v559_v46 = vand.u32 2147483647, %v2081_v13 }
  0x93   :  { %v2093_v36 = vadd.f32 %v585_v26, %v584_v31  ;;  %v509_v39 = vmul.f32 %v508_v62, %v2090_v30  ;;  %v535_v63 = vmul.f32 %v1419_v32, %v534_v53  ;;  %vm542_vm13 = vcmp.eq.f32.partialorder %v541_v54, 8.507059e+37 }
  0x94   :  { %v562_v58 = vor.u32 1.1754944e-38, %v561_v42  ;;  %vm560_vm7 = vcmp.eq.f32.partialorder %v559_v46, 8.507059e+37  ;;  %v649_v23 = vperm.slane %v2036_v34, 0  ;;  %v663_v59 = vsel %vm302_vm14, %v1954_v48, %v643_v3 }
  0x95   :  { %1422 = vrcp.f32 %v2093_v36  ;;  %v621_v44 = vmul.f32 %v509_v39, %v1741_v61  ;;  %v622_v52 = vmul.f32 %v2093_v36, %v1750_v2  ;;  %v596_v33 = vand.u32 2147483647, %v2093_v36 }
  0x96   :  { %v598_v1 = vand.u32 2147483648, %v2093_v36  ;;  %vm592_vm12 = vweird.f32 %v2093_v36  ;;  %v536_v9 = vadd.f32 %v1419_v32, %v535_v63  ;;  %v664_v49 = vsel %vm304_vm0, %v663_v59, %v646_v20 }
  0x97   :  { %v1421_v38 = vpop.eup %1420  ;;  %v2105_v18 = vadd.f32 %v622_v52, %v621_v44 }
  0x98   :  { %v551_v40 = vmul.f32 %v1421_v38, %v2081_v13  ;;  %vm556_vm1 = vweird.f32 %v1421_v38  ;;  %v540_v14 = vsel %vm2123_vm11, %v1419_v32, %v536_v9  ;;  %v599_v31 = vor.u32 1.1754944e-38, %v598_v1 }
  0x99   :  { %vm2110_vm5 = vmor %vm555_vm15, %vm556_vm1  ;;  %1424 = vrcp.f32 %v2105_v18  ;;  %vm2134_vm1 = vcmp.eq.f32.partialorder %v596_v33, 8.507059e+37  ;;  %v545_v62 = vsel %vm542_vm13, %v544_v28, %v540_v14  ;;  %vm629_vm3 = vweird.f32 %v2105_v18 }
  0x9a   :  { %v552_v45 = vsub.f32 1.0, %v551_v40  ;;  %v546_v32 = vmul.f32 %v545_v62, %v2131_v21  ;;  %v633_v41 = vand.u32 2147483647, %v2105_v18  ;;  %v635_v48 = vand.u32 2147483648, %v2105_v18 }
  0x9b   :  { %v1423_v8 = vpop.eup %1422  ;;  %v688_v42 = vmul.f32 %v2105_v18, %v1750_v2 }
  0x9c   :  { %v553_v51 = vmul.f32 %v1421_v38, %v552_v45  ;;  %v588_v0 = vmul.f32 %v1423_v8, %v2093_v36  ;;  %vm593_vm15 = vweird.f32 %v1423_v8  ;;  %v687_v45 = vmul.f32 %v546_v32, %v1741_v61 }
  0x9d   :  { %vm2146_vm2 = vmor %vm592_vm12, %vm593_vm15  ;;  %vm634_vm11 = vcmp.eq.f32.partialorder %v633_v41, 8.507059e+37 }
  0x9e   :  { %v554_v35 = vadd.f32 %v1421_v38, %v553_v51  ;;  %v589_v7 = vsub.f32 1.0, %v588_v0  ;;  %v2173_v33 = vadd.f32 %v688_v42, %v687_v45 }
  0x9f   :  { %v1425_v26 = vpop.eup %1424 }
  0xa0   :  { %v558_v6 = vsel %vm2110_vm5, %v1421_v38, %v554_v35  ;;  %v590_v29 = vmul.f32 %v1423_v8, %v589_v7  ;;  %v625_v39 = vmul.f32 %v1425_v26, %v2105_v18  ;;  %vm630_vm5 = vweird.f32 %v1425_v26 }
  0xa1   :  { %v563_v11 = vsel %vm560_vm7, %v562_v58, %v558_v6  ;;  %vm631_vm7 = vmor %vm629_vm3, %vm630_vm5  ;;  %v636_v58 = vor.u32 1.1754944e-38, %v635_v48  ;;  %v665_v35 = vsel %vm306_vm4, %v664_v49, %v649_v23  ;;  %v640_v6 = vmul.f32 %v2036_v34, %v1818_v47 }
  0xa2   :  { %v564_v22 = vmul.f32 %v563_v11, %v2051_v15  ;;  %v591_v40 = vadd.f32 %v1423_v8, %v590_v29  ;;  %v626_v52 = vsub.f32 1.0, %v625_v39  ;;  %v701_v15 = vand.u32 2147483648, %v2173_v33 }
  0xa3   :  { %v699_v41 = vand.u32 2147483647, %v2173_v33 }
  0xa4   :  { %v565_v38 = vmul.f32 %v564_v22, %v1811_v43  ;;  %v595_v46 = vsel %vm2146_vm2, %v1423_v8, %v591_v40  ;;  %v627_v53 = vmul.f32 %v1425_v26, %v626_v52  ;;  %vm695_vm2 = vweird.f32 %v2173_v33  ;;  %v2213_v52 = vld [vmem:[#allocation4 + $0xd] sm:$0x1] }
  0xa5   :  { %v600_v51 = vsel %vm2134_vm1, %v599_v31, %v595_v46 }
  0xa6   :  { %v2157_v44 = vadd.f32 %v566_v60, %v565_v38  ;;  %v601_v54 = vmul.f32 %v600_v51, %v2078_v10  ;;  %v652_v60 = vperm.slane %v2076_v17, 0  ;;  %v628_v8 = vadd.f32 %v1425_v26, %v627_v53 }
  0xa8   :  { %1426 = vrcp.f32 %v2157_v44  ;;  %v602_v63 = vmul.f32 %v601_v54, %v1811_v43  ;;  %v632_v0 = vsel %vm631_vm7, %v1425_v26, %v628_v8  ;;  %v655_v10 = vperm.slane %v2157_v44, 0 }
  0xa9   :  { %1428 = vrcp.f32 %v2173_v33  ;;  %v637_v1 = vsel %vm634_vm11, %v636_v58, %v632_v0  ;;  %v666_v3 = vsel %vm308_vm6, %v665_v35, %v652_v60  ;;  %v578_v9 = vand.u32 2147483647, %v2157_v44 }
  0xaa   :  { %v2178_v19 = vadd.f32 %v603_v55, %v602_v63  ;;  %v638_v28 = vmul.f32 %v637_v1, %v2090_v30  ;;  %v580_v20 = vand.u32 2147483648, %v2157_v44  ;;  %v667_v27 = vsel %vm310_vm8, %v666_v3, %v655_v10 }
  0xab   :  { %vm574_vm12 = vweird.f32 %v2157_v44  ;;  %vm2194_vm15 = vcmp.eq.f32.partialorder %v578_v9, 8.507059e+37  ;;  %v702_v58 = vor.u32 1.1754944e-38, %v701_v15  ;;  %v725_v35 = vmul.f32 %v2173_v33, %v1750_v2  ;;  %v2263_v15 = vld [vmem:[#allocation4 + $0xf] sm:$0x1] }
  0xac   :  { %1430 = vrcp.f32 %v2178_v19  ;;  %v658_v7 = vperm.slane %v2178_v19, 0  ;;  %v639_v22 = vmul.f32 %v638_v28, %v1811_v43  ;;  %v581_v31 = vor.u32 1.1754944e-38, %v580_v20 }
  0xad   :  { %v615_v45 = vand.u32 2147483647, %v2178_v19  ;;  %v617_v46 = vand.u32 2147483648, %v2178_v19  ;;  %vm611_vm5 = vweird.f32 %v2178_v19  ;;  %v706_v3 = vmul.f32 %v2076_v17, %v1818_v47  ;;  %v2247_v17 = vld [vmem:[#allocation4 + $0xe] sm:$0x1] }
  0xae   :  { %v1427_v4 = vpop.eup %1426  ;;  %v2192_v34 = vadd.f32 %v640_v6, %v639_v22  ;;  %v668_v26 = vsel %vm312_vm9, %v667_v27, %v658_v7  ;;  %v780_v10 = vmul.f32 %v2178_v19, %v1818_v47 }
  0xaf   :  { %v570_v11 = vmul.f32 %v1427_v4, %v2157_v44  ;;  %vm575_vm13 = vweird.f32 %v1427_v4  ;;  %v1429_v30 = vpop.eup %1428  ;;  %v618_v1 = vor.u32 1.1754944e-38, %v617_v46 }
  0xb0   :  { %v691_v59 = vmul.f32 %v1429_v30, %v2173_v33  ;;  %v661_v62 = vperm.slane %v2192_v34, 0  ;;  %1432 = vrcp.f32 %v2192_v34  ;;  %vm2202_vm1 = vmor %vm574_vm12, %vm575_vm13  ;;  %vm696_vm3 = vweird.f32 %v1429_v30 }
  0xb1   :  { %v571_v23 = vsub.f32 1.0, %v570_v11  ;;  %vm2225_vm11 = vmor %vm695_vm2, %vm696_vm3  ;;  %vm700_vm12 = vcmp.eq.f32.partialorder %v699_v41, 8.507059e+37  ;;  %vm2232_vm13 = vcmp.eq.f32.partialorder %v615_v45, 8.507059e+37  ;;  %v681_v11 = vand.u32 2147483647, %v2192_v34 }
  0xb2   :  { %v1431_v39 = vpop.eup %1430  ;;  %v692_v40 = vsub.f32 1.0, %v691_v59  ;;  %v2211_v42 = vsel %vm314_vm10, %v668_v26, %v661_v62  ;;  %v683_v7 = vand.u32 2147483648, %v2192_v34 }
  0xb3   :  { %v572_v29 = vmul.f32 %v1427_v4, %v571_v23  ;;  %v607_v48 = vmul.f32 %v1431_v39, %v2178_v19  ;;  %670 = vst [vmem:[#allocation11 + $0x8] sm:$0xff] %v2211_v42  ;;  %vm612_vm7 = vweird.f32 %v1431_v39 }
  0xb4   :  { %v693_v51 = vmul.f32 %v1429_v30, %v692_v40  ;;  %v684_v59 = vor.u32 1.1754944e-38, %v683_v7 }
  0xb5   :  { %v573_v32 = vadd.f32 %v1427_v4, %v572_v29  ;;  %v608_v53 = vsub.f32 1.0, %v607_v48 }
  0xb6   :  { %v694_v8 = vadd.f32 %v1429_v30, %v693_v51  ;;  %v1433_v63 = vpop.eup %1432 }
  0xb7   :  { %v577_v49 = vsel %vm2202_vm1, %v1427_v4, %v573_v32  ;;  %v609_v0 = vmul.f32 %v1431_v39, %v608_v53  ;;  %v673_v4 = vmul.f32 %v1433_v63, %v2192_v34  ;;  %vm677_vm1 = vweird.f32 %v2192_v34 }
  0xb8   :  { %v582_v54 = vsel %vm2194_vm15, %v581_v31, %v577_v49  ;;  %vm613_vm15 = vmor %vm611_vm5, %vm612_vm7  ;;  %v698_v28 = vsel %vm2225_vm11, %v1429_v30, %v694_v8  ;;  %vm678_vm2 = vweird.f32 %v1433_v63  ;;  %vm682_vm5 = vcmp.eq.f32.partialorder %v681_v11, 8.507059e+37 }
  0xb9   :  { %v583_v60 = vmul.f32 %v582_v54, %v2213_v52  ;;  %v610_v9 = vadd.f32 %v1431_v39, %v609_v0  ;;  %v703_v20 = vsel %vm700_vm12, %v702_v58, %v698_v28  ;;  %v674_v22 = vsub.f32 1.0, %v673_v4  ;;  %vm679_vm3 = vmor %vm677_vm1, %vm678_vm2 }
  0xba   :  { %v704_v27 = vmul.f32 %v703_v20, %v2131_v21 }
  0xbb   :  { %v724_v6 = vmul.f32 %v583_v60, %v1741_v61  ;;  %v614_v14 = vsel %vm613_vm15, %v1431_v39, %v610_v9  ;;  %v675_v26 = vmul.f32 %v1433_v63, %v674_v22 }
  0xbc   :  { %v619_v30 = vsel %vm2232_vm13, %v618_v1, %v614_v14  ;;  %v705_v29 = vmul.f32 %v704_v27, %v1811_v43 }
  0xbd   :  { %v2250_v23 = vadd.f32 %v725_v35, %v724_v6  ;;  %v620_v31 = vmul.f32 %v619_v30, %v2247_v17  ;;  %v676_v62 = vadd.f32 %v1433_v63, %v675_v26 }
  0xbe   :  { %v2259_v21 = vadd.f32 %v706_v3, %v705_v29 }
  0xbf   :  { %1434 = vrcp.f32 %v2250_v23  ;;  %v762_v38 = vmul.f32 %v2250_v23, %v1750_v2  ;;  %v761_v39 = vmul.f32 %v620_v31, %v1741_v61  ;;  %v680_v32 = vsel %vm679_vm3, %v1433_v63, %v676_v62 }
  0xc0   :  { %1436 = vrcp.f32 %v2259_v21  ;;  %v685_v40 = vsel %vm682_vm5, %v684_v59, %v680_v32  ;;  %v736_v49 = vand.u32 2147483647, %v2250_v23  ;;  %v738_v51 = vand.u32 2147483648, %v2250_v23  ;;  %v2304_v59 = vld [vmem:[#allocation4 + $0x10] sm:$0x1] }
  0xc1   :  { %v2267_v41 = vadd.f32 %v762_v38, %v761_v39  ;;  %v686_v45 = vmul.f32 %v685_v40, %v2263_v15  ;;  %vm732_vm7 = vweird.f32 %v2250_v23  ;;  %v720_v60 = vand.u32 2147483648, %v2259_v21  ;;  %v2355_v40 = vld [vmem:[#allocation4 + $0x11] sm:$0x1] }
  0xc2   :  { %vm714_vm12 = vweird.f32 %v2259_v21  ;;  %v718_v0 = vand.u32 2147483647, %v2259_v21  ;;  %vm737_vm15 = vcmp.eq.f32.partialorder %v736_v49, 8.507059e+37  ;;  %v739_v1 = vor.u32 1.1754944e-38, %v738_v51 }
  0xc3   :  { %1438 = vrcp.f32 %v2267_v41  ;;  %v798_v53 = vmul.f32 %v686_v45, %v1741_v61  ;;  %v799_v55 = vmul.f32 %v2267_v41, %v1750_v2  ;;  %v721_v6 = vor.u32 1.1754944e-38, %v720_v60 }
  0xc4   :  { %v773_v20 = vand.u32 2147483647, %v2267_v41  ;;  %v775_v22 = vand.u32 2147483648, %v2267_v41  ;;  %vm769_vm3 = vweird.f32 %v2267_v41  ;;  %v743_v31 = vmul.f32 %v2157_v44, %v1818_v47 }
  0xc5   :  { %v1435_v48 = vpop.eup %1434  ;;  %v2280_v63 = vadd.f32 %v799_v55, %v798_v53 }
  0xc6   :  { %v728_v46 = vmul.f32 %v1435_v48, %v2250_v23  ;;  %vm733_vm11 = vweird.f32 %v1435_v48  ;;  %v1437_v58 = vpop.eup %1436 }
  0xc7   :  { %v710_v8 = vmul.f32 %v1437_v58, %v2259_v21  ;;  %vm2284_vm13 = vmor %vm732_vm7, %vm733_vm11  ;;  %vm715_vm1 = vweird.f32 %v1437_v58  ;;  %1440 = vrcp.f32 %v2280_v63  ;;  %vm719_vm7 = vcmp.eq.f32.partialorder %v718_v0, 8.507059e+37 }
  0xc8   :  { %v729_v54 = vsub.f32 1.0, %v728_v46  ;;  %vm2296_vm2 = vmor %vm714_vm12, %vm715_vm1  ;;  %vm774_vm12 = vcmp.eq.f32.partialorder %v773_v20, 8.507059e+37  ;;  %v839_v51 = vand.u32 2147483647, %v2280_v63  ;;  %v841_v53 = vand.u32 2147483648, %v2280_v63 }
  0xc9   :  { %v1439_v3 = vpop.eup %1438  ;;  %v711_v4 = vsub.f32 1.0, %v710_v8  ;;  %v846_v20 = vmul.f32 %v2192_v34, %v1818_v47 }
  0xca   :  { %v730_v35 = vmul.f32 %v1435_v48, %v729_v54  ;;  %v765_v9 = vmul.f32 %v1439_v3, %v2267_v41  ;;  %vm770_vm5 = vweird.f32 %v1439_v3 }
  0xcb   :  { %v712_v11 = vmul.f32 %v1437_v58, %v711_v4  ;;  %vm2309_vm11 = vmor %vm769_vm3, %vm770_vm5 }
  0xcc   :  { %v731_v28 = vadd.f32 %v1435_v48, %v730_v35  ;;  %v766_v30 = vsub.f32 1.0, %v765_v9 }
  0xcd   :  { %v713_v26 = vadd.f32 %v1437_v58, %v712_v11  ;;  %v1441_v38 = vpop.eup %1440 }
  0xce   :  { %v735_v7 = vsel %vm2284_vm13, %v1435_v48, %v731_v28  ;;  %v767_v62 = vmul.f32 %v1439_v3, %v766_v30  ;;  %v776_v48 = vor.u32 1.1754944e-38, %v775_v22  ;;  %v831_v46 = vmul.f32 %v1441_v38, %v2280_v63 }
  0xcf   :  { %v740_v14 = vsel %vm737_vm15, %v739_v1, %v735_v7  ;;  %v717_v39 = vsel %vm2296_vm2, %v1437_v58, %v713_v26  ;;  %vm835_vm13 = vweird.f32 %v2280_v63  ;;  %vm836_vm15 = vweird.f32 %v1441_v38 }
  0xd0   :  { %v741_v29 = vmul.f32 %v740_v14, %v2213_v52  ;;  %v722_v45 = vsel %vm719_vm7, %v721_v6, %v717_v39  ;;  %v768_v52 = vadd.f32 %v1439_v3, %v767_v62  ;;  %v832_v55 = vsub.f32 1.0, %v831_v46  ;;  %vm837_vm1 = vmor %vm835_vm13, %vm836_vm15 }
  0xd1   :  { %v723_v44 = vmul.f32 %v722_v45, %v2304_v59  ;;  %v865_v58 = vmul.f32 %v2280_v63, %v1750_v2  ;;  %v842_v1 = vor.u32 1.1754944e-38, %v841_v53  ;;  %vm840_vm2 = vcmp.eq.f32.partialorder %v839_v51, 8.507059e+37 }
  0xd2   :  { %v742_v32 = vmul.f32 %v741_v29, %v1811_v43  ;;  %v772_v54 = vsel %vm2309_vm11, %v1439_v3, %v768_v52  ;;  %v833_v8 = vmul.f32 %v1441_v38, %v832_v55 }
  0xd3   :  { %v777_v60 = vsel %vm774_vm12, %v776_v48, %v772_v54  ;;  %v864_v35 = vmul.f32 %v723_v44, %v1741_v61 }
  0xd4   :  { %v2316_v49 = vadd.f32 %v743_v31, %v742_v32  ;;  %v778_v0 = vmul.f32 %v777_v60, %v2247_v17  ;;  %v834_v3 = vadd.f32 %v1441_v38, %v833_v8 }
  0xd5   :  { %v2331_v4 = vadd.f32 %v865_v58, %v864_v35 }
  0xd6   :  { %1442 = vrcp.f32 %v2316_v49  ;;  %v779_v28 = vmul.f32 %v778_v0, %v1811_v43  ;;  %v838_v6 = vsel %vm837_vm1, %v1441_v38, %v834_v3  ;;  %vm751_vm3 = vweird.f32 %v2316_v49 }
  0xd7   :  { %1444 = vrcp.f32 %v2331_v4  ;;  %v843_v17 = vsel %vm840_vm2, %v842_v1, %v838_v6  ;;  %v757_v22 = vand.u32 2147483648, %v2316_v49  ;;  %v755_v14 = vand.u32 2147483647, %v2316_v49 }
  0xd8   :  { %v2335_v11 = vadd.f32 %v780_v10, %v779_v28  ;;  %v844_v19 = vmul.f32 %v843_v17, %v2263_v15  ;;  %v878_v39 = vand.u32 2147483648, %v2331_v4  ;;  %vm872_vm12 = vweird.f32 %v2331_v4 }
  0xd9   :  { %v758_v34 = vor.u32 1.1754944e-38, %v757_v22  ;;  %vm756_vm11 = vcmp.eq.f32.partialorder %v755_v14, 8.507059e+37  ;;  %v876_v45 = vand.u32 2147483647, %v2331_v4  ;;  %v902_v51 = vmul.f32 %v2331_v4, %v1750_v2  ;;  %v2388_v14 = vld [vmem:[#allocation4 + $0x12] sm:$0x1] }
  0xda   :  { %1446 = vrcp.f32 %v2335_v11  ;;  %v845_v30 = vmul.f32 %v844_v19, %v1811_v43  ;;  %v792_v44 = vand.u32 2147483647, %v2335_v11  ;;  %vm788_vm15 = vweird.f32 %v2335_v11 }
  0xdb   :  { %v794_v54 = vand.u32 2147483648, %v2335_v11  ;;  %v879_v35 = vor.u32 1.1754944e-38, %v878_v39  ;;  %v883_v39 = vmul.f32 %v2259_v21, %v1818_v47 }
  0xdc   :  { %v1443_v9 = vpop.eup %1442  ;;  %v2346_v31 = vadd.f32 %v846_v20, %v845_v30 }
  0xdd   :  { %v747_v7 = vmul.f32 %v1443_v9, %v2316_v49  ;;  %vm752_vm5 = vweird.f32 %v1443_v9  ;;  %v1445_v26 = vpop.eup %1444 }
  0xde   :  { %vm2348_vm7 = vmor %vm751_vm3, %vm752_vm5  ;;  %v868_v62 = vmul.f32 %v1445_v26, %v2331_v4  ;;  %1448 = vrcp.f32 %v2346_v31  ;;  %vm873_vm13 = vweird.f32 %v1445_v26  ;;  %vm877_vm3 = vcmp.eq.f32.partialorder %v876_v45, 8.507059e+37 }
  0xdf   :  { %v748_v27 = vsub.f32 1.0, %v747_v7  ;;  %vm2368_vm2 = vmor %vm872_vm12, %vm873_vm13  ;;  %vm2372_vm5 = vcmp.eq.f32.partialorder %v792_v44, 8.507059e+37  ;;  %v860_v20 = vand.u32 2147483648, %v2346_v31 }
  0xe0   :  { %v1447_v32 = vpop.eup %1446  ;;  %v869_v48 = vsub.f32 1.0, %v868_v62 }
  0xe1   :  { %v749_v29 = vmul.f32 %v1443_v9, %v748_v27  ;;  %v784_v46 = vmul.f32 %v1447_v32, %v2335_v11  ;;  %vm789_vm1 = vweird.f32 %v1447_v32 }
  0xe2   :  { %v870_v55 = vmul.f32 %v1445_v26, %v869_v48 }
  0xe3   :  { %v750_v38 = vadd.f32 %v1443_v9, %v749_v29  ;;  %v785_v60 = vsub.f32 1.0, %v784_v46  ;;  %v858_v29 = vand.u32 2147483647, %v2346_v31 }
  0xe4   :  { %v871_v0 = vadd.f32 %v1445_v26, %v870_v55  ;;  %v1449_v10 = vpop.eup %1448 }
  0xe5   :  { %v754_v52 = vsel %vm2348_vm7, %v1443_v9, %v750_v38  ;;  %v786_v1 = vmul.f32 %v1447_v32, %v785_v60  ;;  %vm2377_vm7 = vmor %vm788_vm15, %vm789_vm1  ;;  %v795_v9 = vor.u32 1.1754944e-38, %v794_v54  ;;  %v850_v17 = vmul.f32 %v1449_v10, %v2346_v31 }
  0xe6   :  { %v759_v53 = vsel %vm756_vm11, %v758_v34, %v754_v52  ;;  %vm854_vm11 = vweird.f32 %v2346_v31  ;;  %v875_v7 = vsel %vm2368_vm2, %v1445_v26, %v871_v0  ;;  %vm855_vm12 = vweird.f32 %v1449_v10 }
  0xe7   :  { %v760_v58 = vmul.f32 %v759_v53, %v2355_v40  ;;  %v787_v19 = vadd.f32 %v1447_v32, %v786_v1  ;;  %v880_v22 = vsel %vm877_vm3, %v879_v35, %v875_v7  ;;  %v851_v30 = vsub.f32 1.0, %v850_v17  ;;  %vm2403_vm13 = vmor %vm854_vm11, %vm855_vm12  ;;  %v2412_v53 = vld [vmem:[#allocation4 + $0x13] sm:$0x1] }
  0xe8   :  { %v881_v15 = vmul.f32 %v880_v22, %v2304_v59  ;;  %vm859_vm15 = vcmp.eq.f32.partialorder %v858_v29, 8.507059e+37  ;;  %v2416_v54 = vmul.f32 %v2316_v49, %v1818_v47  ;;  %v1003_v60 = vperm.slane %v2346_v31, 0 }
  0xe9   :  { %v901_v28 = vmul.f32 %v760_v58, %v1741_v61  ;;  %v791_v34 = vsel %vm2377_vm7, %v1447_v32, %v787_v19  ;;  %v852_v62 = vmul.f32 %v1449_v10, %v851_v30  ;;  %v861_v32 = vor.u32 1.1754944e-38, %v860_v20 }
  0xea   :  { %v796_v26 = vsel %vm2372_vm5, %v795_v9, %v791_v34  ;;  %v882_v38 = vmul.f32 %v881_v15, %v1811_v43  ;;  %v1000_v58 = vperm.slane %v2335_v11, 0  ;;  %v448_v15 = vperm.slane %v1801_v37, 0 }
  0xeb   :  { %v2386_v27 = vadd.f32 %v902_v51, %v901_v28  ;;  %v797_v48 = vmul.f32 %v796_v26, %v2388_v14  ;;  %v853_v46 = vadd.f32 %v1449_v10, %v852_v62  ;;  %v997_v51 = vperm.slane %v2316_v49, 0 }
  0xec   :  { %v2423_v35 = vadd.f32 %v883_v39, %v882_v38  ;;  %v451_v34 = vperm.slane %v1809_v16, 0  ;;  %v454_v59 = vperm.slane %v1823_v50, 0  ;;  %v457_v37 = vperm.slane %v1869_v25, 0 }
  0xed   :  { %1450 = vrcp.f32 %v2386_v27  ;;  %v913_v45 = vand.u32 2147483647, %v2386_v27  ;;  %v939_v52 = vmul.f32 %v2386_v27, %v1750_v2  ;;  %v915_v44 = vand.u32 2147483648, %v2386_v27 }
  0xee   :  { %v938_v55 = vmul.f32 %v797_v48, %v1741_v61  ;;  %v857_v8 = vsel %vm2403_vm13, %v1449_v10, %v853_v46  ;;  %vm909_vm1 = vweird.f32 %v2386_v27  ;;  %v1017_v0 = vsel %vm302_vm14, %v2259_v21, %v997_v51 }
  0xef   :  { %v862_v3 = vsel %vm859_vm15, %v861_v32, %v857_v8  ;;  %vm2428_vm2 = vcmp.eq.f32.partialorder %v913_v45, 8.507059e+37  ;;  %v1018_v6 = vsel %vm304_vm0, %v1017_v0, %v1000_v58  ;;  %v916_v17 = vor.u32 1.1754944e-38, %v915_v44 }
  0xf0   :  { %v2432_v28 = vadd.f32 %v939_v52, %v938_v55  ;;  %v863_v9 = vmul.f32 %v862_v3, %v2412_v53  ;;  %v1006_v7 = vperm.slane %v2423_v35, 0  ;;  %v1019_v19 = vsel %vm306_vm4, %v1018_v6, %v1003_v60 }
  0xf1   :  { %v460_v16 = vperm.slane %v1961_v57, 0  ;;  %v468_v32 = vsel %vm302_vm14, %v1770_v12, %v448_v15  ;;  %v463_v46 = vperm.slane %v1972_v5, 0  ;;  %v466_v44 = vperm.slane %v1984_v24, 0 }
  0xf2   :  { %1452 = vrcp.f32 %v2432_v28  ;;  %v952_v21 = vand.u32 2147483648, %v2432_v28  ;;  %v950_v22 = vand.u32 2147483647, %v2432_v28  ;;  %v975_v30 = vmul.f32 %v863_v9, %v1741_v61 }
  0xf3   :  { %v1451_v1 = vpop.eup %1450  ;;  %v976_v29 = vmul.f32 %v2432_v28, %v1750_v2  ;;  %1454 = vrcp.f32 %v2423_v35  ;;  %vm946_vm5 = vweird.f32 %v2432_v28  ;;  %v2452_v39 = vsel %vm308_vm6, %v1019_v19, %v1006_v7 }
  0xf4   :  { %v905_v10 = vmul.f32 %v1451_v1, %v2386_v27  ;;  %vm910_vm3 = vweird.f32 %v1451_v1  ;;  %v953_v62 = vor.u32 1.1754944e-38, %v952_v21  ;;  %vm2466_vm11 = vcmp.eq.f32.partialorder %v950_v22, 8.507059e+37 }
  0xf5   :  { %v2449_v38 = vadd.f32 %v976_v29, %v975_v30  ;;  %vm2457_vm7 = vmor %vm909_vm1, %vm910_vm3  ;;  %v469_v12 = vsel %vm304_vm0, %v468_v32, %v451_v34  ;;  %v802_v58 = vperm.slane %v2081_v13, 0  ;;  %v805_v5 = vperm.slane %v2093_v36, 0 }
  0xf6   :  { %v906_v20 = vsub.f32 1.0, %v905_v10  ;;  %v470_v8 = vsel %vm306_vm4, %v469_v12, %v454_v59  ;;  %v808_v0 = vperm.slane %v2105_v18, 0  ;;  %vm891_vm15 = vweird.f32 %v2423_v35 }
  0xf7   :  { %1456 = vrcp.f32 %v2449_v38  ;;  %vm983_vm12 = vweird.f32 %v2449_v38  ;;  %v987_v50 = vand.u32 2147483647, %v2449_v38  ;;  %v989_v25 = vand.u32 2147483648, %v2449_v38 }
  0xf8   :  { %v907_v26 = vmul.f32 %v1451_v1, %v906_v20  ;;  %v1453_v51 = vpop.eup %1452  ;;  %v471_v6 = vsel %vm308_vm6, %v470_v8, %v457_v37  ;;  %v811_v13 = vperm.slane %v2173_v33, 0  ;;  %v814_v9 = vperm.slane %v2250_v23, 0 }
  0xf9   :  { %v942_v55 = vmul.f32 %v1453_v51, %v2432_v28  ;;  %v2482_v60 = vpop.eup %1454  ;;  %vm947_vm13 = vweird.f32 %v1453_v51  ;;  %v472_v36 = vsel %vm310_vm8, %v471_v6, %v460_v16  ;;  %v817_v49 = vperm.slane %v2267_v41, 0 }
  0xfa   :  { %v908_v45 = vadd.f32 %v1451_v1, %v907_v26  ;;  %v820_v10 = vperm.slane %v2280_v63, 0  ;;  %v473_v21 = vsel %vm312_vm9, %v472_v36, %v463_v46  ;;  %vm2503_vm1 = vmor %vm946_vm5, %vm947_vm13  ;;  %v887_v22 = vmul.f32 %v2482_v60, %v2423_v35 }
  0xfb   :  { %v943_v3 = vsub.f32 1.0, %v942_v55  ;;  %v2509_v41 = vsel %vm314_vm10, %v473_v21, %v466_v44  ;;  %vm892_vm3 = vweird.f32 %v2482_v60  ;;  %v895_v15 = vand.u32 2147483647, %v2423_v35 }
  0xfc   :  { %v912_v57 = vsel %vm2457_vm7, %v1451_v1, %v908_v45  ;;  %475 = vst [vmem:[#allocation10] sm:$0xff] %v2509_v41  ;;  %v888_v16 = vsub.f32 1.0, %v887_v22  ;;  %v957_v45 = vmul.f32 %v2335_v11, %v1818_v47  ;;  %v990_v44 = vor.u32 1.1754944e-38, %v989_v25 }
  0xfd   :  { %v917_v24 = vsel %vm2428_vm2, %v916_v17, %v912_v57  ;;  %v1457_v17 = vpop.eup %1456  ;;  %v944_v7 = vmul.f32 %v1453_v51, %v943_v3  ;;  %vm988_vm7 = vcmp.eq.f32.partialorder %v987_v50, 8.507059e+37  ;;  %v994_v12 = vmul.f32 %v2346_v31, %v1818_v47 }
  0xfe   :  { %v918_v1 = vmul.f32 %v917_v24, %v2355_v40  ;;  %v822_v40 = vsel %vm302_vm14, %v2005_v56, %v802_v58  ;;  %v979_v23 = vmul.f32 %v1457_v17, %v2449_v38  ;;  %vm984_vm2 = vweird.f32 %v1457_v17 }
  0xff   :  { %v823_v63 = vsel %vm304_vm0, %v822_v40, %v805_v5  ;;  %v945_v20 = vadd.f32 %v1453_v51, %v944_v7  ;;  %vm2536_vm5 = vmor %vm983_vm12, %vm984_vm2  ;;  %vm896_vm12 = vcmp.eq.f32.partialorder %v895_v15, 8.507059e+37 }
 0x100   :  { %v919_v18 = vmul.f32 %v918_v1, %v1811_v43  ;;  %v824_v56 = vsel %vm306_vm4, %v823_v63, %v808_v0  ;;  %v980_v30 = vsub.f32 1.0, %v979_v23  ;;  %v1111_v23 = vperm.slane %v2432_v28, 0 }
 0x101   :  { %v825_v29 = vsel %vm308_vm6, %v824_v56, %v811_v13 }
 0x102   :  { %v2513_v19 = vadd.f32 %v2416_v54, %v919_v18  ;;  %v949_v54 = vsel %vm2503_vm1, %v1453_v51, %v945_v20  ;;  %v826_v26 = vsel %vm310_vm8, %v825_v29, %v814_v9  ;;  %v981_v59 = vmul.f32 %v1457_v17, %v980_v30  ;;  %v2601_v30 = vld [vmem:[#allocation4 + $0x15] sm:$0x1] }
 0x103   :  { %v954_v48 = vsel %vm2466_vm11, %v953_v62, %v949_v54  ;;  %v827_v37 = vsel %vm312_vm9, %v826_v26, %v817_v49  ;;  %v897_v51 = vand.u32 2147483648, %v2423_v35  ;;  %vm2555_vm11 = vmor %vm891_vm15, %vm892_vm3  ;;  %v1108_v9 = vperm.slane %v2386_v27, 0 }
 0x104   :  { %1458 = vrcp.f32 %v2513_v19  ;;  %v1009_v34 = vperm.slane %v2513_v19, 0  ;;  %v955_v32 = vmul.f32 %v954_v48, %v2388_v14  ;;  %v2541_v52 = vsel %vm314_vm10, %v827_v37, %v820_v10 }
 0x105   :  { %v982_v62 = vadd.f32 %v1457_v17, %v981_v59  ;;  %829 = vst [vmem:[#allocation10 + $0x8] sm:$0xff] %v2541_v52  ;;  %v889_v14 = vmul.f32 %v2482_v60, %v888_v16  ;;  %v898_v58 = vor.u32 1.1754944e-38, %v897_v51  ;;  %vm928_vm13 = vweird.f32 %v2513_v19 }
 0x106   :  { %v956_v11 = vmul.f32 %v955_v32, %v1811_v43  ;;  %v1021_v57 = vsel %vm310_vm8, %v2452_v39, %v1009_v34  ;;  %v2564_v39 = vld [vmem:[#allocation4 + $0x14] sm:$0x1]  ;;  %v932_v8 = vand.u32 2147483647, %v2513_v19  ;;  %v934_v6 = vand.u32 2147483648, %v2513_v19  ;;  %v1179_v32 = vld [vmem:[#allocation4] sm:$0xff] }
 0x107   :  { %v986_v25 = vsel %vm2536_vm5, %v1457_v17, %v982_v62  ;;  %v890_v55 = vadd.f32 %v2482_v60, %v889_v14  ;;  %v1128_v56 = vsel %vm302_vm14, %v2331_v4, %v1108_v9  ;;  %v1114_v26 = vperm.slane %v2449_v38, 0 }
 0x108   :  { %v2562_v31 = vadd.f32 %v957_v45, %v956_v11  ;;  %v991_v24 = vsel %vm988_vm7, %v990_v44, %v986_v25  ;;  %vm2583_vm1 = vcmp.eq.f32.partialorder %v932_v8, 8.507059e+37  ;;  %v935_v33 = vor.u32 1.1754944e-38, %v934_v6 }
 0x109   :  { %v992_v0 = vmul.f32 %v991_v24, %v2412_v53  ;;  %v894_v1 = vsel %vm2555_vm11, %v2482_v60, %v890_v55  ;;  %v1042_v60 = vmul.f32 %v2449_v38, %v1750_v2  ;;  %v1129_v48 = vsel %vm304_vm0, %v1128_v56, %v1111_v23  ;;  %v1188_v38 = vld [vmem:[#allocation11] sm:$0xff] }
 0x10a   :  { %v1459_v5 = vpop.eup %1458  ;;  %1460 = vrcp.f32 %v2562_v31  ;;  %v1012_v13 = vperm.slane %v2562_v31, 0  ;;  %v899_v36 = vsel %vm896_vm12, %v898_v58, %v894_v1  ;;  %v969_v29 = vand.u32 2147483647, %v2562_v31  ;;  %v2638_v24 = vld [vmem:[#allocation4 + $0x16] sm:$0x1] }
 0x10b   :  { %v924_v3 = vmul.f32 %v1459_v5, %v2513_v19  ;;  %v993_v49 = vmul.f32 %v992_v0, %v1811_v43  ;;  %v900_v10 = vmul.f32 %v899_v36, %v2564_v39  ;;  %vm929_vm15 = vweird.f32 %v1459_v5  ;;  %v1181_v1 = vld [vmem:[#allocation4 + $0x10] sm:$0xff] }
 0x10c   :  { %v1022_v27 = vsel %vm312_vm9, %v1021_v57, %v1012_v13  ;;  %vm2591_vm2 = vmor %vm928_vm13, %vm929_vm15  ;;  %1462 = vlog2.f32 %v2509_v41  ;;  %vm965_vm3 = vweird.f32 %v2562_v31  ;;  %v971_v34 = vand.u32 2147483648, %v2562_v31  ;;  %v1180_v57 = vld [vmem:[#allocation4 + $0x8] sm:$0xff] }
 0x10d   :  { %v925_v53 = vsub.f32 1.0, %v924_v3  ;;  %v2581_v17 = vadd.f32 %v994_v12, %v993_v49  ;;  %v1041_v21 = vmul.f32 %v900_v10, %v1741_v61  ;;  %vm2619_vm7 = vcmp.eq.f32.partialorder %v969_v29, 8.507059e+37 }
 0x10e   :  { %v972_v25 = vor.u32 1.1754944e-38, %v971_v34 }
 0x10f   :  { %v926_v18 = vmul.f32 %v1459_v5, %v925_v53  ;;  %v1015_v63 = vperm.slane %v2581_v17, 0  ;;  %1464 = vrcp.f32 %v2581_v17  ;;  %v2604_v15 = vadd.f32 %v1042_v60, %v1041_v21 }
 0x110   :  { %v1461_v22 = vpop.eup %1460  ;;  %v1037_v44 = vand.u32 2147483648, %v2581_v17  ;;  %1466 = vlog2.f32 %v2541_v52  ;;  %v1130_v52 = vsel %vm306_vm4, %v1129_v48, %v1114_v26  ;;  %vm1031_vm12 = vweird.f32 %v2581_v17 }
 0x111   :  { %v927_v20 = vadd.f32 %v1459_v5, %v926_v18  ;;  %v1023_v54 = vsel %vm314_vm10, %v1022_v27, %v1015_v63  ;;  %v961_v41 = vmul.f32 %v1461_v22, %v2562_v31  ;;  %vm966_vm5 = vweird.f32 %v1461_v22  ;;  %v2660_v27 = vld [vmem:[#allocation4 + $0x17] sm:$0x1] }
 0x112   :  { %1024 = vst [vmem:[#allocation11 + $0x10] sm:$0xff] %v1023_v54  ;;  %v1063_v16 = vmul.f32 %v2604_v15, %v1750_v2  ;;  %v1463_v45 = vpop.eup %1462  ;;  %v1117_v11 = vperm.slane %v2604_v15, 0  ;;  %vm2629_vm11 = vmor %vm965_vm3, %vm966_vm5  ;;  %1468 = vlog2.f32 %v1179_v32  ;;  %v1035_v0 = vand.u32 2147483647, %v2581_v17 }
 0x113   :  { %v931_v28 = vsel %vm2591_vm2, %v1459_v5, %v927_v20  ;;  %v962_v37 = vsub.f32 1.0, %v961_v41  ;;  %v1171_v12 = vmul.f32 0.6931472, %v1463_v45  ;;  %1470 = vlog2.f32 %v1188_v38 }
 0x114   :  { %v936_v4 = vsel %vm2583_vm1, %v935_v33, %v931_v28  ;;  %1472 = vlog2.f32 %v1180_v57  ;;  %v1038_v6 = vor.u32 1.1754944e-38, %v1037_v44  ;;  %v1131_v13 = vsel %vm308_vm6, %v1130_v52, %v1117_v11 }
 0x115   :  { %v937_v59 = vmul.f32 %v936_v4, %v2601_v30  ;;  %v1465_v62 = vpop.eup %1464  ;;  %v963_v14 = vmul.f32 %v1461_v22, %v962_v37  ;;  %1176 = vst [vmem:[#allocation3] sm:$0xff] %v1171_v12  ;;  %vm1036_vm6 = vcmp.eq.f32.partialorder %v1035_v0, 8.507059e+37  ;;  %v1053_v63 = vand.u32 2147483647, %v2604_v15 }
 0x116   :  { %v1027_v55 = vmul.f32 %v1465_v62, %v2581_v17  ;;  %vm1032_vm13 = vweird.f32 %v1465_v62  ;;  %v1467_v36 = vpop.eup %1466  ;;  %vm1049_vm1 = vweird.f32 %v2604_v15  ;;  %v1055_v50 = vand.u32 2147483648, %v2604_v15 }
 0x117   :  { %v1062_v51 = vmul.f32 %v937_v59, %v1741_v61  ;;  %v964_v58 = vadd.f32 %v1461_v22, %v963_v14  ;;  %vm2652_vm15 = vmor %vm1031_vm12, %vm1032_vm13  ;;  %v2658_v7 = vmul.f32 0.6931472, %v1467_v36 }
 0x118   :  { %v1028_v8 = vsub.f32 1.0, %v1027_v55  ;;  %v1469_v21 = vpop.eup %1468 }
 0x119   :  { %v2636_v5 = vadd.f32 %v1063_v16, %v1062_v51  ;;  %v968_v3 = vsel %vm2629_vm11, %v1461_v22, %v964_v58  ;;  %1177 = vst [vmem:[#allocation3 + $0x8] sm:$0xff] %v2658_v7  ;;  %v1183_v23 = vmul.f32 0.6931472, %v1469_v21 }
 0x11a   :  { %v973_v9 = vsel %vm2619_vm7, %v972_v25, %v968_v3  ;;  %v1029_v49 = vmul.f32 %v1465_v62, %v1028_v8 }
 0x11b   :  { %1474 = vrcp.f32 %v2636_v5  ;;  %v1120_v10 = vperm.slane %v2636_v5, 0  ;;  %v974_v53 = vmul.f32 %v973_v9, %v2638_v24  ;;  %v1084_v18 = vmul.f32 %v2636_v5, %v1750_v2 }
 0x11c   :  { %1476 = vlog2.f32 %v2211_v42  ;;  %v1030_v40 = vadd.f32 %v1465_v62, %v1029_v49  ;;  %v1471_v42 = vpop.eup %1470  ;;  %vm1070_vm2 = vweird.f32 %v2636_v5  ;;  %v1074_v34 = vand.u32 2147483647, %v2636_v5 }
 0x11d   :  { %1478 = vlog2.f32 %v1181_v1  ;;  %v1083_v33 = vmul.f32 %v974_v53, %v1741_v61  ;;  %v1473_v20 = vpop.eup %1472  ;;  %v1132_v22 = vsel %vm310_vm8, %v1131_v13, %v1120_v10  ;;  %v1192_v29 = vmul.f32 0.6931472, %v1471_v42 }
 0x11e   :  { %1480 = vlog2.f32 %v1023_v54  ;;  %v1034_v56 = vsel %vm2652_vm15, %v1465_v62, %v1030_v40  ;;  %v1185_v4 = vmul.f32 0.6931472, %v1473_v20  ;;  %v1076_v16 = vand.u32 2147483648, %v2636_v5 }
 0x11f   :  { %1482 = vrcp.f32 %v2604_v15  ;;  %v1039_v28 = vsel %vm1036_vm6, %v1038_v6, %v1034_v56  ;;  %v2673_v41 = vadd.f32 %v1084_v18, %v1083_v33  ;;  %v1197_v59 = vsub.f32 %v1183_v23, %v1192_v29 }
 0x120   :  { %v1040_v48 = vmul.f32 %v1039_v28, %v2660_v27  ;;  %vm2689_vm3 = vcmp.eq.f32.partialorder %v1074_v34, 8.507059e+37  ;;  %v1077_v52 = vor.u32 1.1754944e-38, %v1076_v16  ;;  %v2697_v58 = vld [vmem:[#allocation3 + $0x7] sm:$0xff]  ;;  %v2742_v33 = vmul.f32 %v2423_v35, %v1818_v47 }
 0x121   :  { %v2671_v54 = vpop.eup %1474  ;;  %1484 = vrcp.f32 %v2673_v41  ;;  %v1105_v45 = vmul.f32 %v2673_v41, %v1750_v2  ;;  %v1123_v46 = vperm.slane %v2673_v41, 0  ;;  %1200 = vst [vmem:[#allocation2] sm:$0xff] %v1197_v59  ;;  %v1209_v3 = vsub.f32 %v1197_v59, %v2697_v58 }
 0x122   :  { %v1477_v26 = vpop.eup %1476  ;;  %v1066_v37 = vmul.f32 %v2671_v54, %v2636_v5  ;;  %v1104_v62 = vmul.f32 %v1040_v48, %v1741_v61  ;;  %vm1071_vm8 = vweird.f32 %v2671_v54  ;;  %v1056_v5 = vor.u32 1.1754944e-38, %v1055_v50 }
 0x123   :  { %v1479_v32 = vpop.eup %1478  ;;  %v1194_v44 = vmul.f32 0.6931472, %v1477_v26  ;;  %v1133_v8 = vsel %vm312_vm9, %v1132_v22, %v1123_v46  ;;  %vm2710_vm7 = vmor %vm1070_vm2, %vm1071_vm8  ;;  %vm2718_vm9 = vcmp.eq.f32.partialorder %v1053_v63, 8.507059e+37  ;;  %v1095_v10 = vand.u32 2147483647, %v2673_v41  ;;  %1211 = vst [vmem:[%s2892_s6] sm:$0xff] %v1209_v3 }
 0x124   :  { %v1481_v38 = vpop.eup %1480  ;;  %v1187_v14 = vmul.f32 0.6931472, %v1479_v32  ;;  %v1067_v51 = vsub.f32 1.0, %v1066_v37  ;;  %v2693_v2 = vadd.f32 %v1105_v45, %v1104_v62  ;;  %v1097_v53 = vand.u32 2147483648, %v2673_v41 }
 0x125   :  { %v1483_v11 = vpop.eup %1482  ;;  %v2686_v12 = vsub.f32 %v1185_v4, %v1194_v44  ;;  %v1196_v57 = vmul.f32 0.6931472, %v1481_v38  ;;  %vm2753_vm13 = vcmp.eq.f32.partialorder %v1095_v10, 8.507059e+37 }
 0x126   :  { %v1045_v55 = vmul.f32 %v1483_v11, %v2604_v15  ;;  %v1068_v61 = vmul.f32 %v2671_v54, %v1067_v51  ;;  %vm1050_vm5 = vweird.f32 %v1483_v11  ;;  %v1126_v6 = vperm.slane %v2693_v2, 0 }
 0x127   :  { %1201 = vst [vmem:[#allocation2 + $0x8] sm:$0xff] %v2686_v12  ;;  %v1199_v0 = vsub.f32 %v1187_v14, %v1196_v57  ;;  %1486 = vrcp.f32 %v2693_v2  ;;  %v1485_v9 = vpop.eup %1484  ;;  %vm2736_vm11 = vmor %vm1049_vm1, %vm1050_vm5  ;;  %v1081_v15 = vmul.f32 %v2513_v19, %v1818_v47  ;;  %v1098_v22 = vor.u32 1.1754944e-38, %v1097_v53 }
 0x128   :  { %v1046_v13 = vsub.f32 1.0, %v1045_v55  ;;  %v1069_v36 = vadd.f32 %v2671_v54, %v1068_v61  ;;  %v1134_v60 = vsel %vm314_vm10, %v1133_v8, %v1126_v6  ;;  %v1087_v40 = vmul.f32 %v1485_v9, %v2673_v41 }
 0x129   :  { %1202 = vst [vmem:[#allocation2 + $0x10] sm:$0xff] %v1199_v0  ;;  %1488 = vlog2.f32 %v1134_v60  ;;  %vm1091_vm10 = vweird.f32 %v2673_v41  ;;  %vm1092_vm12 = vweird.f32 %v1485_v9  ;;  %v1264_v29 = vsub.f32 %v2686_v12, %v2658_v7 }
 0x12a   :  { %v1047_v18 = vmul.f32 %v1483_v11, %v1046_v13  ;;  %v1073_v21 = vsel %vm2710_vm7, %v2671_v54, %v1069_v36  ;;  %1135 = vst [vmem:[#allocation10 + $0x10] sm:$0xff] %v1134_v60  ;;  %v1088_v56 = vsub.f32 1.0, %v1087_v40  ;;  %vm1141_vm15 = vweird.f32 %v2693_v2  ;;  %vm2767_vm6 = vmor %vm1091_vm10, %vm1092_vm12 }
 0x12b   :  { %v1078_v23 = vsel %vm2689_vm3, %v1077_v52, %v1073_v21  ;;  %1301 = dma.vmem_to_hbm [thread:$0]  %s1294_s3, 384, %s1296_s20, [#allocation6], %s1620_s11, %s1620_s11, %s1621_s12   ;;  %v1145_v59 = vand.u32 2147483647, %v2693_v2  ;;  %v1147_v41 = vand.u32 2147483648, %v2693_v2  ;;  %v1102_v6 = vmul.f32 %v2562_v31, %v1818_v47 }
 0x12c   :  { %v1048_v63 = vadd.f32 %v1483_v11, %v1047_v18  ;;  %v1079_v20 = vmul.f32 %v1078_v23, %v2601_v30  ;;  %v1089_v4 = vmul.f32 %v1485_v9, %v1088_v56  ;;  %1266 = vst [vmem:[%s2893_s7] sm:$0xff] %v1264_v29 }
 0x12d   :  { %v1487_v54 = vpop.eup %1486  ;;  %v1148_v36 = vor.u32 1.1754944e-38, %v1147_v41  ;;  %vm1146_vm8 = vcmp.eq.f32.partialorder %v1145_v59, 8.507059e+37 }
 0x12e   :  { %v1052_v30 = vsel %vm2736_vm11, %v1483_v11, %v1048_v63  ;;  %v1080_v28 = vmul.f32 %v1079_v20, %v1811_v43  ;;  %v1213_v34 = vld [vmem:[#allocation2 + $0x1] sm:$0xff]  ;;  %v1137_v48 = vmul.f32 %v1487_v54, %v2693_v2  ;;  %v1090_v46 = vadd.f32 %v1485_v9, %v1089_v4  ;;  %v1214_v20 = vld [vmem:[#allocation2 + $0x9] sm:$0x1f] }
 0x12f   :  { %v1057_v19 = vsel %vm2718_vm9, %v1056_v5, %v1052_v30  ;;  %v1215_v37 = vsub.f32 %v1213_v34, %v2697_v58  ;;  %v1220_v16 = vld [vmem:[#allocation2 + $0x2] sm:$0xff]  ;;  %v1489_v62 = vpop.eup %1488  ;;  %vm1142_vm1 = vweird.f32 %v1487_v54  ;;  %v1221_v56 = vld [vmem:[#allocation2 + $0xa] sm:$0x1f] }
 0x130   :  { %v1227_v32 = vld [vmem:[#allocation2 + $0x3] sm:$0xff]  ;;  %v1058_v45 = vmul.f32 %v1057_v19, %v2564_v39  ;;  %v1222_v44 = vsub.f32 %v1220_v16, %v2697_v58  ;;  %v1138_v14 = vsub.f32 1.0, %v1137_v48  ;;  %v1175_v39 = vmul.f32 0.6931472, %v1489_v62  ;;  %vm2804_vm2 = vmor %vm1141_vm15, %vm1142_vm1  ;;  %v1282_v10 = vld [vmem:[#allocation2 + $0xb] sm:$0xff] }
 0x131   :  { %v1234_v38 = vld [vmem:[#allocation2 + $0x4] sm:$0xff]  ;;  %1337 = vst [vmem:[%s2892_s6 + $0x10] sm:$0xff] %v1215_v37  ;;  %v1229_v51 = vsub.f32 %v1227_v32, %v2697_v58  ;;  %v1082_v25 = vadd.f32 %v1081_v15, %v1080_v28  ;;  %v1094_v55 = vsel %vm2767_vm6, %v1485_v9, %v1090_v46  ;;  %v1284_v21 = vsub.f32 %v1282_v10, %v2658_v7  ;;  %v1242_v4 = vld [vmem:[#allocation2 + $0xd] sm:$0x1f]  ;;  %v1283_v62 = vld [vmem:[#allocation2 + $0x13] sm:$0x1f] }
 0x132   :  { %v1236_v11 = vsub.f32 %v1234_v38, %v2697_v58  ;;  %v1241_v12 = vld [vmem:[#allocation2 + $0x5] sm:$0xff]  ;;  %v1059_v50 = vmul.f32 %v1058_v45, %v1811_v43  ;;  %1339 = vst [vmem:[%s2892_s6 + $0x20] sm:$0xff] %v1222_v44  ;;  %v1099_v61 = vsel %vm2753_vm13, %v1098_v22, %v1094_v55  ;;  %v1139_v52 = vmul.f32 %v1487_v54, %v1138_v14  ;;  %v1256_v48 = vld [vmem:[#allocation2 + $0xf] sm:$0x1f] }
 0x133   :  { %v1248_v57 = vld [vmem:[#allocation2 + $0x6] sm:$0xff]  ;;  %1341 = vst [vmem:[%s2892_s6 + $0x30] sm:$0xff] %v1229_v51  ;;  %v1243_v8 = vsub.f32 %v1241_v12, %v2697_v58  ;;  %v1100_v3 = vmul.f32 %v1099_v61, %v2638_v24  ;;  %v1155_v18 = vperm.slane %v1082_v25, 0  ;;  %v1263_v16 = vld [vmem:[#allocation2 + $0x10] sm:$0x1f] }
 0x134   :  { %v1250_v0 = vsub.f32 %v1248_v57, %v2697_v58  ;;  %v1255_v1 = vld [vmem:[#allocation2 + $0x7] sm:$0xff]  ;;  %1178 = vst [vmem:[#allocation3 + $0x10] sm:$0xff] %v1175_v39  ;;  %v1140_v5 = vadd.f32 %v1487_v54, %v1139_v52  ;;  %v1269_v46 = vld [vmem:[#allocation2 + $0x11] sm:$0x1f] }
 0x135   :  { %v1257_v9 = vsub.f32 %v1255_v1, %v2697_v58  ;;  %v1268_v49 = vld [vmem:[#allocation2 + $0x9] sm:$0xff]  ;;  %1343 = vst [vmem:[%s2892_s6 + $0x40] sm:$0xff] %v1236_v11  ;;  %v1101_v2 = vmul.f32 %v1100_v3, %v1811_v43  ;;  %v1061_v58 = vadd.f32 %v2742_v33, %v1059_v50  ;;  %v1152_v33 = vmul.f32 %v2581_v17, %v1818_v47  ;;  %v1276_v44 = vld [vmem:[#allocation2 + $0x12] sm:$0x1f] }
 0x136   :  { %v1270_v24 = vsub.f32 %v1268_v49, %v2658_v7  ;;  %v1275_v31 = vld [vmem:[#allocation2 + $0xa] sm:$0xff]  ;;  %1345 = vst [vmem:[%s2892_s6 + $0x50] sm:$0xff] %v1243_v8  ;;  %v1144_v60 = vsel %vm2804_vm2, %v1487_v54, %v1140_v5 }
 0x137   :  { %v1277_v53 = vsub.f32 %v1275_v31, %v2658_v7  ;;  %1347 = vst [vmem:[%s2892_s6 + $0x60] sm:$0xff] %v1250_v0  ;;  %v1103_v40 = vadd.f32 %v1102_v6, %v1101_v2  ;;  %v1149_v42 = vsel %vm1146_vm8, %v1148_v36, %v1144_v60  ;;  %v1208_v23 = vld [vmem:[#allocation2 + $0x8] sm:$0x1f]  ;;  %v1163_v22 = vsel %vm302_vm14, %v1061_v58, %v1155_v18 }
 0x138   :  { %1349 = vst [vmem:[%s2892_s6 + $0x70] sm:$0xff] %v1257_v9  ;;  %v1150_v63 = vmul.f32 %v1149_v42, %v2660_v27  ;;  %v1228_v7 = vld [vmem:[#allocation2 + $0xb] sm:$0x1f] }
 0x139   :  { %1351 = vst [vmem:[%s2893_s7 + $0x10] sm:$0xff] %v1270_v24  ;;  %v1158_v15 = vperm.slane %v1103_v40, 0  ;;  %v1235_v54 = vld [vmem:[#allocation2 + $0xc] sm:$0x1f] }
 0x13a   :  { %1353 = vst [vmem:[%s2893_s7 + $0x20] sm:$0xff] %v1277_v53  ;;  %v1151_v35 = vmul.f32 %v1150_v63, %v1811_v43  ;;  %v1249_v43 = vld [vmem:[#allocation2 + $0xe] sm:$0x1f] }
 0x13b   :  { %v1204_v27 = vld [vmem:[#allocation3 + $0xf] sm:$0x1f]  ;;  %1355 = vst [vmem:[%s2893_s7 + $0x30] sm:$0xff] %v1284_v21  ;;  %v1164_v34 = vsel %vm304_vm0, %v1163_v22, %v1158_v15 }
 0x13c   :  { %v1210_v47 = vsub.f32 %v1208_v23, %v1204_v27  ;;  %v1216_v17 = vsub.f32 %v1214_v20, %v1204_v27  ;;  %v1223_v29 = vsub.f32 %v1221_v56, %v1204_v27  ;;  %v1153_v30 = vadd.f32 %v1152_v33, %v1151_v35  ;;  %v1206_v37 = vld [vmem:[#allocation3 + $0x10] sm:$0x1f] }
 0x13d   :  { %v1230_v28 = vsub.f32 %v1228_v7, %v1204_v27  ;;  %v1237_v26 = vsub.f32 %v1235_v54, %v1204_v27  ;;  %v1244_v59 = vsub.f32 %v1242_v4, %v1204_v27  ;;  %v1251_v45 = vsub.f32 %v1249_v43, %v1204_v27 }
 0x13e   :  { %1212 = vst [vmem:[%s2892_s6 + $0x8] sm:$0x1f] %v1210_v47  ;;  %v1161_v19 = vperm.slane %v1153_v30, 0  ;;  %v1258_v41 = vsub.f32 %v1256_v48, %v1204_v27  ;;  %v1265_v38 = vsub.f32 %v1263_v16, %v1206_v37  ;;  %v1271_v14 = vsub.f32 %v1269_v46, %v1206_v37 }
 0x13f   :  { %1338 = vst [vmem:[%s2892_s6 + $0x18] sm:$0x1f] %v1216_v17  ;;  %v1278_v51 = vsub.f32 %v1276_v44, %v1206_v37  ;;  %v1285_v11 = vsub.f32 %v1283_v62, %v1206_v37 }
 0x140   :  { %1340 = vst [vmem:[%s2892_s6 + $0x28] sm:$0x1f] %v1223_v29  ;;  %v1165_v32 = vsel %vm306_vm4, %v1164_v34, %v1161_v19 }
 0x141   :  { %1342 = vst [vmem:[%s2892_s6 + $0x38] sm:$0x1f] %v1230_v28 }
 0x142   :  { %1166 = vst [vmem:[#allocation11 + $0x18] sm:$0xf] %v1165_v32 }
 0x143   :  { %1344 = vst [vmem:[%s2892_s6 + $0x48] sm:$0x1f] %v1237_v26 }
 0x144   :  { %1346 = vst [vmem:[%s2892_s6 + $0x58] sm:$0x1f] %v1244_v59 }
 0x145   :  { %1348 = vst [vmem:[%s2892_s6 + $0x68] sm:$0x1f] %v1251_v45 }
 0x146   :  { %1350 = vst [vmem:[%s2892_s6 + $0x78] sm:$0x1f] %v1258_v41 }
 0x147   :  { %1267 = vst [vmem:[%s2893_s7 + $0x8] sm:$0x1f] %v1265_v38 }
 0x148   :  { %1352 = vst [vmem:[%s2893_s7 + $0x18] sm:$0x1f] %v1271_v14 }
 0x149   :  { %1354 = vst [vmem:[%s2893_s7 + $0x28] sm:$0x1f] %v1278_v51 }
 0x14a   :  { %1356 = vst [vmem:[%s2893_s7 + $0x38] sm:$0x1f] %v1285_v11 }
 0x14b   :  { %1314 = dma.vmem_to_hbm [thread:$0]  %s1307_s10, 512, %s1309_s14, [#allocation12], %s1620_s11, %s1620_s11, %s1621_s12  }
 0x14c   :  { %1614 = dma.done.wait [#allocation6], 384  }
 0x14d   :  { %1615 = vsyncadd [#allocation6], 4294966912 }
 0x14e   :  { %1616 = dma.done.wait [#allocation12], 512  }
 0x14f   :  { %1617 = vsyncadd [#allocation12], 4294966784 }
 0x150   :  { %1331 = vsyncpa [#allocation5], 1 }
 0x151   :  { %1332 = vsyncpa [#allocation8], 1 }
 0x152   :  { %1333 = vsyncpa [#allocation6], 1 }
 0x153   :  { %1334 = vsyncpa [#allocation12], 1 }

</bundles_post_ra>
